<compile_context>
chip_gen: v7x
topology: tpu7x:2x2x1
jax: 0.10.0
libtpu: 0.0.40
codegen_flags: <defaults>
</compile_context>

<pallas_src>
import math

import numpy as np
import jax
import jax.numpy as jnp
from jax.experimental import pallas as pl
from jax.experimental.pallas import tpu as pltpu

# ----------------------------- small config ---------------------------------
VOCAB = 128
HIDDEN = 64
N_HEADS = 4
HEAD_DIM = HIDDEN // N_HEADS          # 16
INTER = 128
N_LAYERS = 2
MAX_POS = 64
ROPE_THETA = 10000.0
RMS_EPS = 1e-6
SCALE_EMB = 12.0
SCALE_DEPTH = 1.4
LAYER_SCALE = SCALE_DEPTH / math.sqrt(N_LAYERS)
INIT_STD = 0.02
NEG_MASK = -1e9                        # finite "minus infinity" for masking

BATCH = 2
SEQ = 8


# ------------------------------ Pallas kernel --------------------------------
def _rms_norm(x, w, eps):
    # x: (R, H) float32, w: (1, H)
    var = jnp.mean(x * x, axis=-1, keepdims=True)
    return x * jax.lax.rsqrt(var + eps) * w


def minicpm_kernel(h_ref, bias_ref, cc_ref, ss_ref, hmask_ref, coll_ref,
                   ln1_ref, wqkvr_ref, wo_ref, ln2_ref, wgu_ref, wd_ref,
                   fln_ref, out_ref):
    rows, hidden = h_ref.shape           # rows = B*S
    seq = out_ref.shape[0]               # S
    batch = rows // seq
    n_layers = ln1_ref.shape[0]
    inter = wd_ref.shape[1]
    n_heads = hidden // HEAD_DIM
    inv_sqrt_d = 1.0 / math.sqrt(HEAD_DIM)

    h = h_ref[...]                        # (R, H)
    bias = bias_ref[...]                  # (n_heads*R, R)  key-pad + batch-block mask
    cc = cc_ref[...]                      # (R, 2H)  [cos|cos] tiled per head
    ss = ss_ref[...]                      # (R, 2H)  [sin|sin] tiled per head
    hmask = hmask_ref[...]                # (n_heads*R, H) row-block h keeps head-h cols
    coll = coll_ref[...]                  # (R, n_heads*R) sums per-head row blocks

    for l in range(n_layers):
        # ---- attention block -------------------------------------------------
        xn = _rms_norm(h, ln1_ref[l], RMS_EPS)
        # fused projection, 128-aligned column groups: [Wq | Wk | Wq@R | Wk@R | Wv]
        proj = jnp.dot(xn, wqkvr_ref[l], preferred_element_type=jnp.float32)  # (R, 5H)
        qk = proj[:, :2 * hidden] * cc + proj[:, 2 * hidden:4 * hidden] * ss  # RoPE
        v = proj[:, 4 * hidden:]                                              # (R, H)
        q = qk[:, :hidden]
        k = qk[:, hidden:]

        # head-expanded Q: row block h holds q with only head-h columns kept
        q_exp = jnp.concatenate([q] * n_heads, axis=0) * hmask                # (nH*R, H)
        # all-head scores in one MXU call; rows = (head, query), cols = keys
        s = jax.lax.dot_general(q_exp, k, (((1,), (1,)), ((), ())),
                                preferred_element_type=jnp.float32)           # (nH*R, R)
        s = s * inv_sqrt_d + bias
        m = jnp.max(s, axis=-1, keepdims=True)
        p = jnp.exp(s - m)
        p = p * pl.reciprocal(jnp.sum(p, axis=-1, keepdims=True), approx=True)
        # all-head context; keep only head-h columns of row block h, then collapse
        ctx = jnp.dot(p, v, preferred_element_type=jnp.float32) * hmask       # (nH*R, H)
        ctx_cat = jnp.dot(coll, ctx, preferred_element_type=jnp.float32)      # (R, H)
        h = h + jnp.dot(ctx_cat, wo_ref[l], preferred_element_type=jnp.float32)

        # ---- MLP block -------------------------------------------------------
        hn = _rms_norm(h, ln2_ref[l], RMS_EPS)
        gu = jnp.dot(hn, wgu_ref[l], preferred_element_type=jnp.float32)      # (R, 2I)
        gate = gu[:, :inter]
        up = gu[:, inter:]
        act = gate * jax.nn.sigmoid(gate) * up                                # SiLU*up
        h = h + jnp.dot(act, wd_ref[l], preferred_element_type=jnp.float32)

    hf = _rms_norm(h, fln_ref[...], RMS_EPS)                                  # (R, H)
    # lane-dense output: (S, B*H) so stores are full 128-lane wide
    out_ref[...] = jnp.concatenate(
        [hf[b * seq:(b + 1) * seq, :] for b in range(batch)], axis=1)


# --------------------------- host-side preparation ---------------------------
def rotary_cache():
    inv_freq = 1.0 / (ROPE_THETA ** (jnp.arange(0, HEAD_DIM, 2, dtype=jnp.float32) / HEAD_DIM))
    t = jnp.arange(MAX_POS, dtype=jnp.float32)
    freqs = jnp.outer(t, inv_freq)
    emb = jnp.concatenate([freqs, freqs], axis=-1)   # (MAX_POS, HEAD_DIM)
    return jnp.cos(emb), jnp.sin(emb)


def rotate_half_matrix():
    """Block-diagonal (H, H) matrix R with (x @ R) == per-head rotate_half(x)."""
    half = HEAD_DIM // 2
    r = np.zeros((HEAD_DIM, HEAD_DIM), np.float32)
    for i in range(half):
        r[i + half, i] = -1.0           # out[i] = -in[i + half]
    for i in range(half, HEAD_DIM):
        r[i - half, i] = 1.0            # out[i] =  in[i - half]
    return jnp.asarray(np.kron(np.eye(N_HEADS, dtype=np.float32), r))


def init_params(key):
    params = {"layers": []}
    key, sub = jax.random.split(key)
    params["embed"] = jax.random.normal(sub, (VOCAB, HIDDEN), jnp.float32) * INIT_STD
    for _ in range(N_LAYERS):
        lp = {}
        for name, shape in [("wq", (HIDDEN, HIDDEN)),
                            ("wk", (HIDDEN, HIDDEN)),
                            ("wv", (HIDDEN, HIDDEN)),
                            ("wo", (HIDDEN, HIDDEN)),
                            ("wg", (HIDDEN, INTER)),
                            ("wu", (HIDDEN, INTER)),
                            ("wd", (INTER, HIDDEN))]:
            key, sub = jax.random.split(key)
            lp[name] = jax.random.normal(sub, shape, jnp.float32) * INIT_STD
        lp["ln1"] = jnp.ones((1, HIDDEN), jnp.float32)
        lp["ln2"] = jnp.ones((1, HIDDEN), jnp.float32)
        params["layers"].append(lp)
    params["final_ln"] = jnp.ones((1, HIDDEN), jnp.float32)
    return params


def prepare(params):
    """One-time host-side fusion & constant building (hoisted out of forward)."""
    R = rotate_half_matrix()
    layers = params["layers"]
    ln1 = jnp.stack([lp["ln1"] for lp in layers])                     # (L,1,H)
    ln2 = jnp.stack([lp["ln2"] for lp in layers])                     # (L,1,H)
    # 128-aligned column groups: [Wq | Wk | Wq@R | Wk@R | Wv]
    wqkvr = jnp.stack([jnp.concatenate(
        [lp["wq"], lp["wk"], lp["wq"] @ R, lp["wk"] @ R, lp["wv"]], axis=1)
        for lp in layers])                                            # (L,H,5H)
    wo = jnp.stack([lp["wo"] * LAYER_SCALE for lp in layers])         # (L,H,H)
    wgu = jnp.stack([jnp.concatenate([lp["wg"], lp["wu"]], axis=1)
                     for lp in layers])                               # (L,H,2I)
    wd = jnp.stack([lp["wd"] * LAYER_SCALE for lp in layers])         # (L,I,H)

    rows = BATCH * SEQ
    cos_c, sin_c = rotary_cache()
    cos = jnp.tile(cos_c[:SEQ], (1, N_HEADS))                         # (S, H)
    sin = jnp.tile(sin_c[:SEQ], (1, N_HEADS))
    cc = jnp.tile(jnp.concatenate([cos, cos], axis=1), (BATCH, 1))    # (R, 2H)
    ss = jnp.tile(jnp.concatenate([sin, sin], axis=1), (BATCH, 1))

    base = np.kron(np.eye(N_HEADS, dtype=np.float32),
                   np.ones((1, HEAD_DIM), np.float32))                # (nH, H)
    hmask = jnp.asarray(np.repeat(base, rows, axis=0))                # (nH*R, H)
    coll = jnp.asarray(np.tile(np.eye(rows, dtype=np.float32),
                               (1, N_HEADS)))                         # (R, nH*R)

    return dict(embed=params["embed"], ln1=ln1, ln2=ln2, wqkvr=wqkvr, wo=wo,
                wgu=wgu, wd=wd, fln=params["final_ln"],
                cc=cc, ss=ss, hmask=hmask, coll=coll)


@jax.jit
def minicpm_forward(input_ids, attention_mask, prep):
    b, s = input_ids.shape
    rows = b * s
    H, I, L = HIDDEN, INTER, N_LAYERS

    # TODO(synk): token-embedding gather stays in XLA (no clean tiny-kernel
    # equivalent without a manual DMA gather).
    h0 = (prep["embed"][input_ids] * SCALE_EMB).reshape(rows, H).astype(jnp.float32)

    # additive bias: key-padding mask (reference discards causal mask) +
    # cross-batch block mask (needed because the batch is merged onto one axis)
    batch_ids = jnp.repeat(jnp.arange(b), s)                          # (R,)
    key_valid = attention_mask.reshape(-1) != 0                       # (R,)
    ok = (batch_ids[:, None] == batch_ids[None, :]) & key_valid[None, :]
    bias_rr = jnp.where(ok, jnp.float32(0.0), jnp.float32(NEG_MASK))  # (R, R)
    bias = jnp.tile(bias_rr, (N_HEADS, 1))                            # (nH*R, R)

    out = pl.pallas_call(
        minicpm_kernel,
        out_shape=jax.ShapeDtypeStruct((s, b * H), jnp.float32),
        grid=(1,),
        in_specs=[
            pl.BlockSpec((rows, H), lambda i: (0, 0)),                # h0
            pl.BlockSpec((N_HEADS * rows, rows), lambda i: (0, 0)),   # bias
            pl.BlockSpec((rows, 2 * H), lambda i: (0, 0)),            # cos (tiled)
            pl.BlockSpec((rows, 2 * H), lambda i: (0, 0)),            # sin (tiled)
            pl.BlockSpec((N_HEADS * rows, H), lambda i: (0, 0)),      # head mask
            pl.BlockSpec((rows, N_HEADS * rows), lambda i: (0, 0)),   # collapse
            pl.BlockSpec((L, 1, H), lambda i: (0, 0, 0)),             # ln1
            pl.BlockSpec((L, H, 5 * H), lambda i: (0, 0, 0)),         # Wq|Wk|WqR|WkR|Wv
            pl.BlockSpec((L, H, H), lambda i: (0, 0, 0)),             # Wo (scaled)
            pl.BlockSpec((L, 1, H), lambda i: (0, 0, 0)),             # ln2
            pl.BlockSpec((L, H, 2 * I), lambda i: (0, 0, 0)),         # Wgate|Wup
            pl.BlockSpec((L, I, H), lambda i: (0, 0, 0)),             # Wdown (scaled)
            pl.BlockSpec((1, H), lambda i: (0, 0)),                   # final ln
        ],
        out_specs=pl.BlockSpec((s, b * H), lambda i: (0, 0)),
        compiler_params=pltpu.CompilerParams(
            dimension_semantics=("arbitrary",)),
    )(h0, bias, prep["cc"], prep["ss"], prep["hmask"], prep["coll"],
      prep["ln1"], prep["wqkvr"], prep["wo"], prep["ln2"], prep["wgu"],
      prep["wd"], prep["fln"])

    # (S, B*H) -> (B, S, H)
    return out.reshape(s, b, H).transpose(1, 0, 2)


# ------------------------- pure-JAX reference (checking) ---------------------
def _ref_rms(x, w, eps):
    var = jnp.mean(x * x, axis=-1, keepdims=True)
    return x * jax.lax.rsqrt(var + eps) * w.reshape(-1)


def ref_forward(input_ids, attention_mask, params):
    b, s = input_ids.shape
    cos_c, sin_c = rotary_cache()
    cos, sin = cos_c[:s], sin_c[:s]
    bias = jnp.where(attention_mask[:, None, None, :] == 0,
                     jnp.float32(NEG_MASK), jnp.float32(0.0))   # (B,1,1,S)
    h = params["embed"][input_ids] * SCALE_EMB                  # (B,S,H)

    def rope(t):  # (B, nH, S, hd)
        half = HEAD_DIM // 2
        rot = jnp.concatenate([-t[..., half:], t[..., :half]], axis=-1)
        return t * cos[None, None] + rot * sin[None, None]

    for lp in params["layers"]:
        xn = _ref_rms(h, lp["ln1"], RMS_EPS)
        q = (xn @ lp["wq"]).reshape(b, s, N_HEADS, HEAD_DIM).transpose(0, 2, 1, 3)
        k = (xn @ lp["wk"]).reshape(b, s, N_HEADS, HEAD_DIM).transpose(0, 2, 1, 3)
        v = (xn @ lp["wv"]).reshape(b, s, N_HEADS, HEAD_DIM).transpose(0, 2, 1, 3)
        q, k = rope(q), rope(k)
        scores = jnp.einsum("bhqd,bhkd->bhqk", q, k) / math.sqrt(HEAD_DIM) + bias
        p = jax.nn.softmax(scores, axis=-1)
        attn = jnp.einsum("bhqk,bhkd->bhqd", p, v).transpose(0, 2, 1, 3).reshape(b, s, HIDDEN)
        attn = attn @ lp["wo"]
        h = h + attn * LAYER_SCALE
        hn = _ref_rms(h, lp["ln2"], RMS_EPS)
        gate = hn @ lp["wg"]
        up = hn @ lp["wu"]
        mlp = (gate * jax.nn.sigmoid(gate) * up) @ lp["wd"]
        h = h + mlp * LAYER_SCALE
    return _ref_rms(h, params["final_ln"], RMS_EPS)


# ----------------------------------- main ------------------------------------
if __name__ == "__main__":
    key = jax.random.PRNGKey(0)
    params = init_params(key)
    prep = prepare(params)          # host-side fusion hoisted out of forward

    key_ids, _ = jax.random.split(jax.random.PRNGKey(0))
    input_ids = jax.random.randint(key_ids, (BATCH, SEQ), 0, VOCAB, dtype=jnp.int32)
    attention_mask = jnp.ones((BATCH, SEQ), dtype=jnp.int32)
    attention_mask = attention_mask.at[1, :2].set(0)   # exercise padding mask

    out = jax.block_until_ready(minicpm_forward(input_ids, attention_mask, prep))

    ref = jax.block_until_ready(ref_forward(input_ids, attention_mask, params))
    max_err = float(jnp.max(jnp.abs(out - ref)))
    assert out.shape == (BATCH, SEQ, HIDDEN)
    assert np.isfinite(np.asarray(out)).all()
    assert max_err < 1e-2, f"mismatch vs reference: {max_err}"

    print("KERNEL_OK")
</pallas_src>

<mosaic_0001>
module attributes {stable_mosaic.version = 11 : i64} {
  func.func @minicpm_kernel(%arg0: i32, %arg1: memref<16x64xf32, #tpu.memory_space<vmem>>, %arg2: memref<64x16xf32, #tpu.memory_space<vmem>>, %arg3: memref<16x128xf32, #tpu.memory_space<vmem>>, %arg4: memref<16x128xf32, #tpu.memory_space<vmem>>, %arg5: memref<64x64xf32, #tpu.memory_space<vmem>>, %arg6: memref<16x64xf32, #tpu.memory_space<vmem>>, %arg7: memref<2x1x64xf32, #tpu.memory_space<vmem>>, %arg8: memref<2x64x320xf32, #tpu.memory_space<vmem>>, %arg9: memref<2x64x64xf32, #tpu.memory_space<vmem>>, %arg10: memref<2x1x64xf32, #tpu.memory_space<vmem>>, %arg11: memref<2x64x256xf32, #tpu.memory_space<vmem>>, %arg12: memref<2x128x64xf32, #tpu.memory_space<vmem>>, %arg13: memref<1x64xf32, #tpu.memory_space<vmem>>, %arg14: memref<8x128xf32, #tpu.memory_space<vmem>>) attributes {dimension_semantics = [#tpu.dimension_semantics<arbitrary>], iteration_bounds = array<i64: 1>, scalar_prefetch = 0 : i64, scratch_operands = 0 : i64, tpu.core_type = #tpu.core_type<tc>, window_params = [{pipeline_mode = #tpu.pipeline_mode<synchronous>, transform_indices = @transform_0, window_bounds = array<i64: 16, 64>}, {pipeline_mode = #tpu.pipeline_mode<synchronous>, transform_indices = @transform_1, window_bounds = array<i64: 64, 16>}, {pipeline_mode = #tpu.pipeline_mode<synchronous>, transform_indices = @transform_2, window_bounds = array<i64: 16, 128>}, {pipeline_mode = #tpu.pipeline_mode<synchronous>, transform_indices = @transform_3, window_bounds = array<i64: 16, 128>}, {pipeline_mode = #tpu.pipeline_mode<synchronous>, transform_indices = @transform_4, window_bounds = array<i64: 64, 64>}, {pipeline_mode = #tpu.pipeline_mode<synchronous>, transform_indices = @transform_5, window_bounds = array<i64: 16, 64>}, {pipeline_mode = #tpu.pipeline_mode<synchronous>, transform_indices = @transform_6, window_bounds = array<i64: 2, 1, 64>}, {pipeline_mode = #tpu.pipeline_mode<synchronous>, transform_indices = @transform_7, window_bounds = array<i64: 2, 64, 320>}, {pipeline_mode = #tpu.pipeline_mode<synchronous>, transform_indices = @transform_8, window_bounds = array<i64: 2, 64, 64>}, {pipeline_mode = #tpu.pipeline_mode<synchronous>, transform_indices = @transform_9, window_bounds = array<i64: 2, 1, 64>}, {pipeline_mode = #tpu.pipeline_mode<synchronous>, transform_indices = @transform_10, window_bounds = array<i64: 2, 64, 256>}, {pipeline_mode = #tpu.pipeline_mode<synchronous>, transform_indices = @transform_11, window_bounds = array<i64: 2, 128, 64>}, {pipeline_mode = #tpu.pipeline_mode<synchronous>, transform_indices = @transform_12, window_bounds = array<i64: 1, 64>}, {pipeline_mode = #tpu.pipeline_mode<synchronous>, transform_indices = @transform_13, window_bounds = array<i64: 8, 128>}]} {
    %c0 = arith.constant 0 : index
    %c0_0 = arith.constant 0 : index
    %0 = vector.load %arg1[%c0, %c0_0] : memref<16x64xf32, #tpu.memory_space<vmem>>, vector<16x64xf32>
    %c0_1 = arith.constant 0 : index
    %c0_2 = arith.constant 0 : index
    %1 = vector.load %arg2[%c0_1, %c0_2] : memref<64x16xf32, #tpu.memory_space<vmem>>, vector<64x16xf32>
    %c0_3 = arith.constant 0 : index
    %c0_4 = arith.constant 0 : index
    %2 = vector.load %arg3[%c0_3, %c0_4] : memref<16x128xf32, #tpu.memory_space<vmem>>, vector<16x128xf32>
    %c0_5 = arith.constant 0 : index
    %c0_6 = arith.constant 0 : index
    %3 = vector.load %arg4[%c0_5, %c0_6] : memref<16x128xf32, #tpu.memory_space<vmem>>, vector<16x128xf32>
    %c0_7 = arith.constant 0 : index
    %c0_8 = arith.constant 0 : index
    %4 = vector.load %arg5[%c0_7, %c0_8] : memref<64x64xf32, #tpu.memory_space<vmem>>, vector<64x64xf32>
    %c0_9 = arith.constant 0 : index
    %c0_10 = arith.constant 0 : index
    %5 = vector.load %arg6[%c0_9, %c0_10] : memref<16x64xf32, #tpu.memory_space<vmem>>, vector<16x64xf32>
    %c0_11 = arith.constant 0 : index
    %c0_12 = arith.constant 0 : index
    %c0_13 = arith.constant 0 : index
    %6 = vector.load %arg7[%c0_11, %c0_12, %c0_13] : memref<2x1x64xf32, #tpu.memory_space<vmem>>, vector<1x1x64xf32>
    %7 = vector.shape_cast %6 : vector<1x1x64xf32> to vector<1x64xf32>
    %8 = arith.mulf %0, %0 : vector<16x64xf32>
    %cst = arith.constant dense<0.000000e+00> : vector<16xf32>
    %9 = vector.multi_reduction <add>, %8, %cst [1] : vector<16x64xf32> to vector<16xf32>
    %10 = vector.shape_cast %9 : vector<16xf32> to vector<16x1xf32>
    %cst_14 = arith.constant 6.400000e+01 : f32
    %11 = vector.broadcast %cst_14 : f32 to vector<16x1xf32>
    %12 = arith.divf %10, %11 : vector<16x1xf32>
    %cst_15 = arith.constant 9.99999997E-7 : f32
    %13 = vector.broadcast %cst_15 : f32 to vector<16x1xf32>
    %14 = arith.addf %12, %13 : vector<16x1xf32>
    %15 = math.rsqrt %14 : vector<16x1xf32>
    %16 = vector.broadcast %15 : vector<16x1xf32> to vector<16x64xf32>
    %17 = arith.mulf %0, %16 : vector<16x64xf32>
    %18 = vector.broadcast %7 : vector<1x64xf32> to vector<16x64xf32>
    %19 = arith.mulf %17, %18 : vector<16x64xf32>
    %c0_16 = arith.constant 0 : index
    %c0_17 = arith.constant 0 : index
    %c0_18 = arith.constant 0 : index
    %20 = vector.load %arg8[%c0_16, %c0_17, %c0_18] : memref<2x64x320xf32, #tpu.memory_space<vmem>>, vector<1x64x320xf32>
    %21 = vector.shape_cast %20 : vector<1x64x320xf32> to vector<64x320xf32>
    %cst_19 = arith.constant dense<0.000000e+00> : vector<16x320xf32>
    %22 = tpu.matmul %19, %21, %cst_19 {dimension_numbers = #tpu.dot_dimension_numbers<[1], [0], [0], [1], [0, 0, 1, 1], [], []>} : vector<16x64xf32>, vector<64x320xf32>, vector<16x320xf32> -> vector<16x320xf32>
    %23 = vector.extract_strided_slice %22 {offsets = [0, 0], sizes = [16, 128], strides = [1, 1]} : vector<16x320xf32> to vector<16x128xf32>
    %24 = arith.mulf %23, %2 : vector<16x128xf32>
    %25 = vector.extract_strided_slice %22 {offsets = [0, 128], sizes = [16, 128], strides = [1, 1]} : vector<16x320xf32> to vector<16x128xf32>
    %26 = arith.mulf %25, %3 : vector<16x128xf32>
    %27 = arith.addf %24, %26 : vector<16x128xf32>
    %28 = vector.extract_strided_slice %22 {offsets = [0, 256], sizes = [16, 64], strides = [1, 1]} : vector<16x320xf32> to vector<16x64xf32>
    %29 = vector.extract_strided_slice %27 {offsets = [0, 0], sizes = [16, 64], strides = [1, 1]} : vector<16x128xf32> to vector<16x64xf32>
    %30 = vector.extract_strided_slice %27 {offsets = [0, 64], sizes = [16, 64], strides = [1, 1]} : vector<16x128xf32> to vector<16x64xf32>
    %31 = tpu.concatenate %29, %29, %29, %29 in 0 : vector<16x64xf32>, vector<16x64xf32>, vector<16x64xf32>, vector<16x64xf32> -> vector<64x64xf32>
    %32 = arith.mulf %31, %4 : vector<64x64xf32>
    %cst_20 = arith.constant dense<0.000000e+00> : vector<64x16xf32>
    %33 = tpu.matmul %32, %30, %cst_20 {dimension_numbers = #tpu.dot_dimension_numbers<[1], [1], [0], [0], [0, 0, 1, 0], [], []>} : vector<64x64xf32>, vector<16x64xf32>, vector<64x16xf32> -> vector<64x16xf32>
    %cst_21 = arith.constant 2.500000e-01 : f32
    %34 = vector.broadcast %cst_21 : f32 to vector<64x16xf32>
    %35 = arith.mulf %33, %34 : vector<64x16xf32>
    %36 = arith.addf %35, %1 : vector<64x16xf32>
    %cst_22 = arith.constant dense<0xFF800000> : vector<64xf32>
    %37 = vector.multi_reduction <maximumf>, %36, %cst_22 [1] : vector<64x16xf32> to vector<64xf32>
    %38 = vector.shape_cast %37 : vector<64xf32> to vector<64x1xf32>
    %39 = vector.broadcast %38 : vector<64x1xf32> to vector<64x16xf32>
    %40 = arith.subf %36, %39 : vector<64x16xf32>
    %41 = math.exp %40 : vector<64x16xf32>
    %cst_23 = arith.constant dense<0.000000e+00> : vector<64xf32>
    %42 = vector.multi_reduction <add>, %41, %cst_23 [1] : vector<64x16xf32> to vector<64xf32>
    %43 = vector.shape_cast %42 : vector<64xf32> to vector<64x1xf32>
    %44 = tpu.reciprocal %43 {approx = true} : vector<64x1xf32> -> vector<64x1xf32>
    %45 = vector.broadcast %44 : vector<64x1xf32> to vector<64x16xf32>
    %46 = arith.mulf %41, %45 : vector<64x16xf32>
    %cst_24 = arith.constant dense<0.000000e+00> : vector<64x64xf32>
    %47 = tpu.matmul %46, %28, %cst_24 {dimension_numbers = #tpu.dot_dimension_numbers<[1], [0], [0], [1], [0, 0, 1, 1], [], []>} : vector<64x16xf32>, vector<16x64xf32>, vector<64x64xf32> -> vector<64x64xf32>
    %48 = arith.mulf %47, %4 : vector<64x64xf32>
    %cst_25 = arith.constant dense<0.000000e+00> : vector<16x64xf32>
    %49 = tpu.matmul %5, %48, %cst_25 {dimension_numbers = #tpu.dot_dimension_numbers<[1], [0], [0], [1], [0, 0, 1, 1], [], []>} : vector<16x64xf32>, vector<64x64xf32>, vector<16x64xf32> -> vector<16x64xf32>
    %c0_26 = arith.constant 0 : index
    %c0_27 = arith.constant 0 : index
    %c0_28 = arith.constant 0 : index
    %50 = vector.load %arg9[%c0_26, %c0_27, %c0_28] : memref<2x64x64xf32, #tpu.memory_space<vmem>>, vector<1x64x64xf32>
    %51 = vector.shape_cast %50 : vector<1x64x64xf32> to vector<64x64xf32>
    %cst_29 = arith.constant dense<0.000000e+00> : vector<16x64xf32>
    %52 = tpu.matmul %49, %51, %cst_29 {dimension_numbers = #tpu.dot_dimension_numbers<[1], [0], [0], [1], [0, 0, 1, 1], [], []>} : vector<16x64xf32>, vector<64x64xf32>, vector<16x64xf32> -> vector<16x64xf32>
    %53 = arith.addf %0, %52 : vector<16x64xf32>
    %c0_30 = arith.constant 0 : index
    %c0_31 = arith.constant 0 : index
    %c0_32 = arith.constant 0 : index
    %54 = vector.load %arg10[%c0_30, %c0_31, %c0_32] : memref<2x1x64xf32, #tpu.memory_space<vmem>>, vector<1x1x64xf32>
    %55 = vector.shape_cast %54 : vector<1x1x64xf32> to vector<1x64xf32>
    %56 = arith.mulf %53, %53 : vector<16x64xf32>
    %cst_33 = arith.constant dense<0.000000e+00> : vector<16xf32>
    %57 = vector.multi_reduction <add>, %56, %cst_33 [1] : vector<16x64xf32> to vector<16xf32>
    %58 = vector.shape_cast %57 : vector<16xf32> to vector<16x1xf32>
    %cst_34 = arith.constant 6.400000e+01 : f32
    %59 = vector.broadcast %cst_34 : f32 to vector<16x1xf32>
    %60 = arith.divf %58, %59 : vector<16x1xf32>
    %cst_35 = arith.constant 9.99999997E-7 : f32
    %61 = vector.broadcast %cst_35 : f32 to vector<16x1xf32>
    %62 = arith.addf %60, %61 : vector<16x1xf32>
    %63 = math.rsqrt %62 : vector<16x1xf32>
    %64 = vector.broadcast %63 : vector<16x1xf32> to vector<16x64xf32>
    %65 = arith.mulf %53, %64 : vector<16x64xf32>
    %66 = vector.broadcast %55 : vector<1x64xf32> to vector<16x64xf32>
    %67 = arith.mulf %65, %66 : vector<16x64xf32>
    %c0_36 = arith.constant 0 : index
    %c0_37 = arith.constant 0 : index
    %c0_38 = arith.constant 0 : index
    %68 = vector.load %arg11[%c0_36, %c0_37, %c0_38] : memref<2x64x256xf32, #tpu.memory_space<vmem>>, vector<1x64x256xf32>
    %69 = vector.shape_cast %68 : vector<1x64x256xf32> to vector<64x256xf32>
    %cst_39 = arith.constant dense<0.000000e+00> : vector<16x256xf32>
    %70 = tpu.matmul %67, %69, %cst_39 {dimension_numbers = #tpu.dot_dimension_numbers<[1], [0], [0], [1], [0, 0, 1, 1], [], []>} : vector<16x64xf32>, vector<64x256xf32>, vector<16x256xf32> -> vector<16x256xf32>
    %71 = vector.extract_strided_slice %70 {offsets = [0, 0], sizes = [16, 128], strides = [1, 1]} : vector<16x256xf32> to vector<16x128xf32>
    %72 = vector.extract_strided_slice %70 {offsets = [0, 128], sizes = [16, 128], strides = [1, 1]} : vector<16x256xf32> to vector<16x128xf32>
    %73 = arith.negf %71 : vector<16x128xf32>
    %74 = math.exp %73 : vector<16x128xf32>
    %cst_40 = arith.constant 1.000000e+00 : f32
    %75 = vector.broadcast %cst_40 : f32 to vector<16x128xf32>
    %76 = arith.addf %75, %74 : vector<16x128xf32>
    %77 = arith.divf %75, %76 : vector<16x128xf32>
    %78 = arith.mulf %71, %77 : vector<16x128xf32>
    %79 = arith.mulf %78, %72 : vector<16x128xf32>
    %c0_41 = arith.constant 0 : index
    %c0_42 = arith.constant 0 : index
    %c0_43 = arith.constant 0 : index
    %80 = vector.load %arg12[%c0_41, %c0_42, %c0_43] : memref<2x128x64xf32, #tpu.memory_space<vmem>>, vector<1x128x64xf32>
    %81 = vector.shape_cast %80 : vector<1x128x64xf32> to vector<128x64xf32>
    %cst_44 = arith.constant dense<0.000000e+00> : vector<16x64xf32>
    %82 = tpu.matmul %79, %81, %cst_44 {dimension_numbers = #tpu.dot_dimension_numbers<[1], [0], [0], [1], [0, 0, 1, 1], [], []>} : vector<16x128xf32>, vector<128x64xf32>, vector<16x64xf32> -> vector<16x64xf32>
    %83 = arith.addf %53, %82 : vector<16x64xf32>
    %c1 = arith.constant 1 : index
    %c0_45 = arith.constant 0 : index
    %c0_46 = arith.constant 0 : index
    %84 = vector.load %arg7[%c1, %c0_45, %c0_46] : memref<2x1x64xf32, #tpu.memory_space<vmem>>, vector<1x1x64xf32>
    %85 = vector.shape_cast %84 : vector<1x1x64xf32> to vector<1x64xf32>
    %86 = arith.mulf %83, %83 : vector<16x64xf32>
    %cst_47 = arith.constant dense<0.000000e+00> : vector<16xf32>
    %87 = vector.multi_reduction <add>, %86, %cst_47 [1] : vector<16x64xf32> to vector<16xf32>
    %88 = vector.shape_cast %87 : vector<16xf32> to vector<16x1xf32>
    %cst_48 = arith.constant 6.400000e+01 : f32
    %89 = vector.broadcast %cst_48 : f32 to vector<16x1xf32>
    %90 = arith.divf %88, %89 : vector<16x1xf32>
    %cst_49 = arith.constant 9.99999997E-7 : f32
    %91 = vector.broadcast %cst_49 : f32 to vector<16x1xf32>
    %92 = arith.addf %90, %91 : vector<16x1xf32>
    %93 = math.rsqrt %92 : vector<16x1xf32>
    %94 = vector.broadcast %93 : vector<16x1xf32> to vector<16x64xf32>
    %95 = arith.mulf %83, %94 : vector<16x64xf32>
    %96 = vector.broadcast %85 : vector<1x64xf32> to vector<16x64xf32>
    %97 = arith.mulf %95, %96 : vector<16x64xf32>
    %c1_50 = arith.constant 1 : index
    %c0_51 = arith.constant 0 : index
    %c0_52 = arith.constant 0 : index
    %98 = vector.load %arg8[%c1_50, %c0_51, %c0_52] : memref<2x64x320xf32, #tpu.memory_space<vmem>>, vector<1x64x320xf32>
    %99 = vector.shape_cast %98 : vector<1x64x320xf32> to vector<64x320xf32>
    %cst_53 = arith.constant dense<0.000000e+00> : vector<16x320xf32>
    %100 = tpu.matmul %97, %99, %cst_53 {dimension_numbers = #tpu.dot_dimension_numbers<[1], [0], [0], [1], [0, 0, 1, 1], [], []>} : vector<16x64xf32>, vector<64x320xf32>, vector<16x320xf32> -> vector<16x320xf32>
    %101 = vector.extract_strided_slice %100 {offsets = [0, 0], sizes = [16, 128], strides = [1, 1]} : vector<16x320xf32> to vector<16x128xf32>
    %102 = arith.mulf %101, %2 : vector<16x128xf32>
    %103 = vector.extract_strided_slice %100 {offsets = [0, 128], sizes = [16, 128], strides = [1, 1]} : vector<16x320xf32> to vector<16x128xf32>
    %104 = arith.mulf %103, %3 : vector<16x128xf32>
    %105 = arith.addf %102, %104 : vector<16x128xf32>
    %106 = vector.extract_strided_slice %100 {offsets = [0, 256], sizes = [16, 64], strides = [1, 1]} : vector<16x320xf32> to vector<16x64xf32>
    %107 = vector.extract_strided_slice %105 {offsets = [0, 0], sizes = [16, 64], strides = [1, 1]} : vector<16x128xf32> to vector<16x64xf32>
    %108 = vector.extract_strided_slice %105 {offsets = [0, 64], sizes = [16, 64], strides = [1, 1]} : vector<16x128xf32> to vector<16x64xf32>
    %109 = tpu.concatenate %107, %107, %107, %107 in 0 : vector<16x64xf32>, vector<16x64xf32>, vector<16x64xf32>, vector<16x64xf32> -> vector<64x64xf32>
    %110 = arith.mulf %109, %4 : vector<64x64xf32>
    %cst_54 = arith.constant dense<0.000000e+00> : vector<64x16xf32>
    %111 = tpu.matmul %110, %108, %cst_54 {dimension_numbers = #tpu.dot_dimension_numbers<[1], [1], [0], [0], [0, 0, 1, 0], [], []>} : vector<64x64xf32>, vector<16x64xf32>, vector<64x16xf32> -> vector<64x16xf32>
    %cst_55 = arith.constant 2.500000e-01 : f32
    %112 = vector.broadcast %cst_55 : f32 to vector<64x16xf32>
    %113 = arith.mulf %111, %112 : vector<64x16xf32>
    %114 = arith.addf %113, %1 : vector<64x16xf32>
    %cst_56 = arith.constant dense<0xFF800000> : vector<64xf32>
    %115 = vector.multi_reduction <maximumf>, %114, %cst_56 [1] : vector<64x16xf32> to vector<64xf32>
    %116 = vector.shape_cast %115 : vector<64xf32> to vector<64x1xf32>
    %117 = vector.broadcast %116 : vector<64x1xf32> to vector<64x16xf32>
    %118 = arith.subf %114, %117 : vector<64x16xf32>
    %119 = math.exp %118 : vector<64x16xf32>
    %cst_57 = arith.constant dense<0.000000e+00> : vector<64xf32>
    %120 = vector.multi_reduction <add>, %119, %cst_57 [1] : vector<64x16xf32> to vector<64xf32>
    %121 = vector.shape_cast %120 : vector<64xf32> to vector<64x1xf32>
    %122 = tpu.reciprocal %121 {approx = true} : vector<64x1xf32> -> vector<64x1xf32>
    %123 = vector.broadcast %122 : vector<64x1xf32> to vector<64x16xf32>
    %124 = arith.mulf %119, %123 : vector<64x16xf32>
    %cst_58 = arith.constant dense<0.000000e+00> : vector<64x64xf32>
    %125 = tpu.matmul %124, %106, %cst_58 {dimension_numbers = #tpu.dot_dimension_numbers<[1], [0], [0], [1], [0, 0, 1, 1], [], []>} : vector<64x16xf32>, vector<16x64xf32>, vector<64x64xf32> -> vector<64x64xf32>
    %126 = arith.mulf %125, %4 : vector<64x64xf32>
    %cst_59 = arith.constant dense<0.000000e+00> : vector<16x64xf32>
    %127 = tpu.matmul %5, %126, %cst_59 {dimension_numbers = #tpu.dot_dimension_numbers<[1], [0], [0], [1], [0, 0, 1, 1], [], []>} : vector<16x64xf32>, vector<64x64xf32>, vector<16x64xf32> -> vector<16x64xf32>
    %c1_60 = arith.constant 1 : index
    %c0_61 = arith.constant 0 : index
    %c0_62 = arith.constant 0 : index
    %128 = vector.load %arg9[%c1_60, %c0_61, %c0_62] : memref<2x64x64xf32, #tpu.memory_space<vmem>>, vector<1x64x64xf32>
    %129 = vector.shape_cast %128 : vector<1x64x64xf32> to vector<64x64xf32>
    %cst_63 = arith.constant dense<0.000000e+00> : vector<16x64xf32>
    %130 = tpu.matmul %127, %129, %cst_63 {dimension_numbers = #tpu.dot_dimension_numbers<[1], [0], [0], [1], [0, 0, 1, 1], [], []>} : vector<16x64xf32>, vector<64x64xf32>, vector<16x64xf32> -> vector<16x64xf32>
    %131 = arith.addf %83, %130 : vector<16x64xf32>
    %c1_64 = arith.constant 1 : index
    %c0_65 = arith.constant 0 : index
    %c0_66 = arith.constant 0 : index
    %132 = vector.load %arg10[%c1_64, %c0_65, %c0_66] : memref<2x1x64xf32, #tpu.memory_space<vmem>>, vector<1x1x64xf32>
    %133 = vector.shape_cast %132 : vector<1x1x64xf32> to vector<1x64xf32>
    %134 = arith.mulf %131, %131 : vector<16x64xf32>
    %cst_67 = arith.constant dense<0.000000e+00> : vector<16xf32>
    %135 = vector.multi_reduction <add>, %134, %cst_67 [1] : vector<16x64xf32> to vector<16xf32>
    %136 = vector.shape_cast %135 : vector<16xf32> to vector<16x1xf32>
    %cst_68 = arith.constant 6.400000e+01 : f32
    %137 = vector.broadcast %cst_68 : f32 to vector<16x1xf32>
    %138 = arith.divf %136, %137 : vector<16x1xf32>
    %cst_69 = arith.constant 9.99999997E-7 : f32
    %139 = vector.broadcast %cst_69 : f32 to vector<16x1xf32>
    %140 = arith.addf %138, %139 : vector<16x1xf32>
    %141 = math.rsqrt %140 : vector<16x1xf32>
    %142 = vector.broadcast %141 : vector<16x1xf32> to vector<16x64xf32>
    %143 = arith.mulf %131, %142 : vector<16x64xf32>
    %144 = vector.broadcast %133 : vector<1x64xf32> to vector<16x64xf32>
    %145 = arith.mulf %143, %144 : vector<16x64xf32>
    %c1_70 = arith.constant 1 : index
    %c0_71 = arith.constant 0 : index
    %c0_72 = arith.constant 0 : index
    %146 = vector.load %arg11[%c1_70, %c0_71, %c0_72] : memref<2x64x256xf32, #tpu.memory_space<vmem>>, vector<1x64x256xf32>
    %147 = vector.shape_cast %146 : vector<1x64x256xf32> to vector<64x256xf32>
    %cst_73 = arith.constant dense<0.000000e+00> : vector<16x256xf32>
    %148 = tpu.matmul %145, %147, %cst_73 {dimension_numbers = #tpu.dot_dimension_numbers<[1], [0], [0], [1], [0, 0, 1, 1], [], []>} : vector<16x64xf32>, vector<64x256xf32>, vector<16x256xf32> -> vector<16x256xf32>
    %149 = vector.extract_strided_slice %148 {offsets = [0, 0], sizes = [16, 128], strides = [1, 1]} : vector<16x256xf32> to vector<16x128xf32>
    %150 = vector.extract_strided_slice %148 {offsets = [0, 128], sizes = [16, 128], strides = [1, 1]} : vector<16x256xf32> to vector<16x128xf32>
    %151 = arith.negf %149 : vector<16x128xf32>
    %152 = math.exp %151 : vector<16x128xf32>
    %cst_74 = arith.constant 1.000000e+00 : f32
    %153 = vector.broadcast %cst_74 : f32 to vector<16x128xf32>
    %154 = arith.addf %153, %152 : vector<16x128xf32>
    %155 = arith.divf %153, %154 : vector<16x128xf32>
    %156 = arith.mulf %149, %155 : vector<16x128xf32>
    %157 = arith.mulf %156, %150 : vector<16x128xf32>
    %c1_75 = arith.constant 1 : index
    %c0_76 = arith.constant 0 : index
    %c0_77 = arith.constant 0 : index
    %158 = vector.load %arg12[%c1_75, %c0_76, %c0_77] : memref<2x128x64xf32, #tpu.memory_space<vmem>>, vector<1x128x64xf32>
    %159 = vector.shape_cast %158 : vector<1x128x64xf32> to vector<128x64xf32>
    %cst_78 = arith.constant dense<0.000000e+00> : vector<16x64xf32>
    %160 = tpu.matmul %157, %159, %cst_78 {dimension_numbers = #tpu.dot_dimension_numbers<[1], [0], [0], [1], [0, 0, 1, 1], [], []>} : vector<16x128xf32>, vector<128x64xf32>, vector<16x64xf32> -> vector<16x64xf32>
    %161 = arith.addf %131, %160 : vector<16x64xf32>
    %c0_79 = arith.constant 0 : index
    %c0_80 = arith.constant 0 : index
    %162 = vector.load %arg13[%c0_79, %c0_80] : memref<1x64xf32, #tpu.memory_space<vmem>>, vector<1x64xf32>
    %163 = arith.mulf %161, %161 : vector<16x64xf32>
    %cst_81 = arith.constant dense<0.000000e+00> : vector<16xf32>
    %164 = vector.multi_reduction <add>, %163, %cst_81 [1] : vector<16x64xf32> to vector<16xf32>
    %165 = vector.shape_cast %164 : vector<16xf32> to vector<16x1xf32>
    %cst_82 = arith.constant 6.400000e+01 : f32
    %166 = vector.broadcast %cst_82 : f32 to vector<16x1xf32>
    %167 = arith.divf %165, %166 : vector<16x1xf32>
    %cst_83 = arith.constant 9.99999997E-7 : f32
    %168 = vector.broadcast %cst_83 : f32 to vector<16x1xf32>
    %169 = arith.addf %167, %168 : vector<16x1xf32>
    %170 = math.rsqrt %169 : vector<16x1xf32>
    %171 = vector.broadcast %170 : vector<16x1xf32> to vector<16x64xf32>
    %172 = arith.mulf %161, %171 : vector<16x64xf32>
    %173 = vector.broadcast %162 : vector<1x64xf32> to vector<16x64xf32>
    %174 = arith.mulf %172, %173 : vector<16x64xf32>
    %175 = vector.extract_strided_slice %174 {offsets = [0, 0], sizes = [8, 64], strides = [1, 1]} : vector<16x64xf32> to vector<8x64xf32>
    %176 = vector.extract_strided_slice %174 {offsets = [8, 0], sizes = [8, 64], strides = [1, 1]} : vector<16x64xf32> to vector<8x64xf32>
    %177 = tpu.concatenate %175, %176 in 1 : vector<8x64xf32>, vector<8x64xf32> -> vector<8x128xf32>
    %c0_84 = arith.constant 0 : index
    %c0_85 = arith.constant 0 : index
    %178 = vector.load %arg14[%c0_84, %c0_85] : memref<8x128xf32, #tpu.memory_space<vmem>>, vector<8x128xf32>
    tpu.vector_store %arg14[%c0_84, %c0_85], %177 {strides = array<i32>} : memref<8x128xf32, #tpu.memory_space<vmem>>, vector<8x128xf32>,
    return
  }
  func.func @transform_0(%arg0: i32) -> (i32, i32) {
    %c0_i32 = arith.constant 0 : i32
    %c0_i32_0 = arith.constant 0 : i32
    %c0_i32_1 = arith.constant 0 : i32
    return %c0_i32, %c0_i32_0 : i32, i32
  }
  func.func @transform_1(%arg0: i32) -> (i32, i32) {
    %c0_i32 = arith.constant 0 : i32
    %c0_i32_0 = arith.constant 0 : i32
    %c0_i32_1 = arith.constant 0 : i32
    return %c0_i32, %c0_i32_0 : i32, i32
  }
  func.func @transform_2(%arg0: i32) -> (i32, i32) {
    %c0_i32 = arith.constant 0 : i32
    %c0_i32_0 = arith.constant 0 : i32
    %c0_i32_1 = arith.constant 0 : i32
    return %c0_i32, %c0_i32_0 : i32, i32
  }
  func.func @transform_3(%arg0: i32) -> (i32, i32) {
    %c0_i32 = arith.constant 0 : i32
    %c0_i32_0 = arith.constant 0 : i32
    %c0_i32_1 = arith.constant 0 : i32
    return %c0_i32, %c0_i32_0 : i32, i32
  }
  func.func @transform_4(%arg0: i32) -> (i32, i32) {
    %c0_i32 = arith.constant 0 : i32
    %c0_i32_0 = arith.constant 0 : i32
    %c0_i32_1 = arith.constant 0 : i32
    return %c0_i32, %c0_i32_0 : i32, i32
  }
  func.func @transform_5(%arg0: i32) -> (i32, i32) {
    %c0_i32 = arith.constant 0 : i32
    %c0_i32_0 = arith.constant 0 : i32
    %c0_i32_1 = arith.constant 0 : i32
    return %c0_i32, %c0_i32_0 : i32, i32
  }
  func.func @transform_6(%arg0: i32) -> (i32, i32, i32) {
    %c0_i32 = arith.constant 0 : i32
    %c0_i32_0 = arith.constant 0 : i32
    %c0_i32_1 = arith.constant 0 : i32
    %c0_i32_2 = arith.constant 0 : i32
    return %c0_i32, %c0_i32_0, %c0_i32_1 : i32, i32, i32
  }
  func.func @transform_7(%arg0: i32) -> (i32, i32, i32) {
    %c0_i32 = arith.constant 0 : i32
    %c0_i32_0 = arith.constant 0 : i32
    %c0_i32_1 = arith.constant 0 : i32
    %c0_i32_2 = arith.constant 0 : i32
    return %c0_i32, %c0_i32_0, %c0_i32_1 : i32, i32, i32
  }
  func.func @transform_8(%arg0: i32) -> (i32, i32, i32) {
    %c0_i32 = arith.constant 0 : i32
    %c0_i32_0 = arith.constant 0 : i32
    %c0_i32_1 = arith.constant 0 : i32
    %c0_i32_2 = arith.constant 0 : i32
    return %c0_i32, %c0_i32_0, %c0_i32_1 : i32, i32, i32
  }
  func.func @transform_9(%arg0: i32) -> (i32, i32, i32) {
    %c0_i32 = arith.constant 0 : i32
    %c0_i32_0 = arith.constant 0 : i32
    %c0_i32_1 = arith.constant 0 : i32
    %c0_i32_2 = arith.constant 0 : i32
    return %c0_i32, %c0_i32_0, %c0_i32_1 : i32, i32, i32
  }
  func.func @transform_10(%arg0: i32) -> (i32, i32, i32) {
    %c0_i32 = arith.constant 0 : i32
    %c0_i32_0 = arith.constant 0 : i32
    %c0_i32_1 = arith.constant 0 : i32
    %c0_i32_2 = arith.constant 0 : i32
    return %c0_i32, %c0_i32_0, %c0_i32_1 : i32, i32, i32
  }
  func.func @transform_11(%arg0: i32) -> (i32, i32, i32) {
    %c0_i32 = arith.constant 0 : i32
    %c0_i32_0 = arith.constant 0 : i32
    %c0_i32_1 = arith.constant 0 : i32
    %c0_i32_2 = arith.constant 0 : i32
    return %c0_i32, %c0_i32_0, %c0_i32_1 : i32, i32, i32
  }
  func.func @transform_12(%arg0: i32) -> (i32, i32) {
    %c0_i32 = arith.constant 0 : i32
    %c0_i32_0 = arith.constant 0 : i32
    %c0_i32_1 = arith.constant 0 : i32
    return %c0_i32, %c0_i32_0 : i32, i32
  }
  func.func @transform_13(%arg0: i32) -> (i32, i32) {
    %c0_i32 = arith.constant 0 : i32
    %c0_i32_0 = arith.constant 0 : i32
    %c0_i32_1 = arith.constant 0 : i32
    return %c0_i32, %c0_i32_0 : i32, i32
  }
}

</mosaic_0001>

<bundles_post_ra>
// kernel: minicpm_forward.1
= control target key start
LH: loop header
LB: loop body
LE: loop exit
PB: predicated region body
PF: predicated region fallthrough
CT: control target
= control target key end

     0   :  { %18 = vsyncpa [#allocation3], 0  ;;  %s4003_s0 = inlined_call_operand.vmem [shape: f32[16,64], index: 0, kind: input, shape index: {}]   ;;  %s4004_s1 = inlined_call_operand.vmem [shape: f32[64,16], index: 1, kind: input, shape index: {}]   ;;  %s4005_s2 = inlined_call_operand.hbm [shape: f32[16,128], index: 2, kind: input, shape index: {}]   ;;  %s4006_s3 = inlined_call_operand.vmem [shape: f32[16,128], index: 3, kind: input, shape index: {}]   ;;  %s4007_s4 = inlined_call_operand.hbm [shape: f32[64,64], index: 4, kind: input, shape index: {}]   ;;  %s4008_s5 = inlined_call_operand.hbm [shape: f32[16,64], index: 5, kind: input, shape index: {}]   ;;  %s4009_s6 = inlined_call_operand.vmem [shape: f32[2,1,64], index: 6, kind: input, shape index: {}]   ;;  %s4010_s7 = inlined_call_operand.vmem [shape: f32[2,64,320], index: 7, kind: input, shape index: {}]   ;;  %s4011_s8 = inlined_call_operand.vmem [shape: f32[2,64,64], index: 8, kind: input, shape index: {}]   ;;  %s4012_s9 = inlined_call_operand.hbm [shape: f32[2,1,64], index: 9, kind: input, shape index: {}]   ;;  %s4013_s10 = inlined_call_operand.vmem [shape: f32[2,64,256], index: 10, kind: input, shape index: {}]   ;;  %s4014_s11 = inlined_call_operand.vmem [shape: f32[2,128,64], index: 11, kind: input, shape index: {}]   ;;  %s4015_s12 = inlined_call_operand.vmem [shape: f32[1,64], index: 12, kind: input, shape index: {}]   ;;  %s4016_s13 = inlined_call_operand.vmem [shape: f32[8,128], index: 13, kind: output, shape index: {}]  }
   0x1   :  { %19 = vsyncpa [#allocation5], 0 }
   0x2   :  { %20 = vsyncpa [#allocation8], 0  ;;  %s3156_s25 = smov [#allocation4]   ;;  %s3157_s27 = smov [#allocation2]  }
   0x3   :  { %s44_s26 = sshll.u32 %s3156_s25, 4  ;;  %s30_s28 = sshll.u32 %s3157_s27, 4  ;;  %s45_s26 = int_to_ptr.vmem [resolvable:$true] %s44_s26  ;;  %s3236_s28 = int_to_ptr.vmem [resolvable:$true] %s30_s28 }
   0x4   :  { %s3062_s14 = scalar_lea.hbm %s4007_s4, 1024 }
   0x5   :  { %p3063_p0 = scmp.ne.s32.totalorder %s4007_s4, %s3062_s14  ;;  %p3066_p1 = scmp.lt.u32.totalorder %s3062_s14, %s4007_s4 }
   0x7   :  { %p3068_p2 = pnand %p3066_p1, %p3063_p0 }
   0x9   :  { %3071 = shalt.err (!%p3068_p2)
}
   0xa   :  { %s3072_s19 = scalar_lea.vmem %s45_s26, 1024  ;;  %p3077_p4 = scmp.lt.s32.totalorder %s45_s26, %s45_s26 }
   0xb   :  { %p3073_p3 = scmp.ne.s32.totalorder %s45_s26, %s3072_s19  ;;  %p3078_p5 = scmp.lt.s32.totalorder %s3072_s19, %s3072_s19 }
   0xd   :  { %p3079_p6 = por %p3078_p5, %p3077_p4 }
   0xf   :  { %p3080_p7 = pnand %p3079_p6, %p3073_p3 }
  0x11   :  { %3083 = shalt.err (!%p3080_p7)
}
  0x12   :  { %s3158_s20 = smov 128   ;;  %s3159_s21 = smov 8  }
  0x13   :  { %50 = dma.hbm_to_vmem [thread:$0]  %s4007_s4, 1024, %s45_s26, [#allocation5], %s3158_s20, %s3158_s20, %s3159_s21  }
  0x14   :  { %s3084_s27 = scalar_lea.hbm %s4005_s2, 256 }
  0x15   :  { %p3085_p8 = scmp.ne.s32.totalorder %s4005_s2, %s3084_s27  ;;  %p3088_p9 = scmp.lt.u32.totalorder %s3084_s27, %s4005_s2 }
  0x17   :  { %p3090_p10 = pnand %p3088_p9, %p3085_p8 }
  0x19   :  { %3093 = shalt.err (!%p3090_p10)
}
  0x1a   :  { %s3094_s16 = scalar_lea.vmem %s3236_s28, 256  ;;  %p3099_p12 = scmp.lt.s32.totalorder %s3236_s28, %s3236_s28 }
  0x1b   :  { %p3095_p11 = scmp.ne.s32.totalorder %s3236_s28, %s3094_s16  ;;  %p3100_p13 = scmp.lt.s32.totalorder %s3094_s16, %s3094_s16 }
  0x1d   :  { %p3101_p0 = por %p3100_p13, %p3099_p12 }
  0x1f   :  { %p3102_p1 = pnand %p3101_p0, %p3095_p11 }
  0x21   :  { %3105 = shalt.err (!%p3102_p1)
}
  0x22   :  { %36 = dma.hbm_to_vmem [thread:$0]  %s4005_s2, 256, %s3236_s28, [#allocation3], %s3158_s20, %s3158_s20, %s3159_s21  }
  0x23   :  { %s3160_s17 = smov [#allocation6]   ;;  %s3161_s19 = smov [#allocation7]  }
  0x24   :  { %s56_s18 = sshll.u32 %s3160_s17, 4  ;;  %s74_s22 = sshll.u32 %s3161_s19, 4  ;;  %s57_s18 = int_to_ptr.vmem [resolvable:$true] %s56_s18  ;;  %s3273_s22 = int_to_ptr.vmem [resolvable:$true] %s74_s22 }
  0x25   :  { %s3106_s25 = scalar_lea.hbm %s4008_s5, 256 }
  0x26   :  { %p3107_p2 = scmp.ne.s32.totalorder %s4008_s5, %s3106_s25  ;;  %p3110_p3 = scmp.lt.u32.totalorder %s3106_s25, %s4008_s5 }
  0x28   :  { %p3112_p4 = pnand %p3110_p3, %p3107_p2 }
  0x2a   :  { %3115 = shalt.err (!%p3112_p4)
}
  0x2b   :  { %s3116_s2 = scalar_lea.vmem %s57_s18, 256  ;;  %p3121_p6 = scmp.lt.s32.totalorder %s57_s18, %s57_s18 }
  0x2c   :  { %p3117_p5 = scmp.ne.s32.totalorder %s57_s18, %s3116_s2  ;;  %p3122_p7 = scmp.lt.s32.totalorder %s3116_s2, %s3116_s2 }
  0x2e   :  { %p3123_p8 = por %p3122_p7, %p3121_p6 }
  0x30   :  { %p3124_p9 = pnand %p3123_p8, %p3117_p5 }
  0x32   :  { %3127 = shalt.err (!%p3124_p9)
}
  0x33   :  { %62 = dma.hbm_to_vmem [thread:$0]  %s4008_s5, 256, %s57_s18, [#allocation5], %s3158_s20, %s3158_s20, %s3159_s21  }
  0x34   :  { %s3128_s26 = scalar_lea.hbm %s4012_s9, 32 }
  0x35   :  { %p3129_p10 = scmp.ne.s32.totalorder %s4012_s9, %s3128_s26  ;;  %p3132_p11 = scmp.lt.u32.totalorder %s3128_s26, %s4012_s9 }
  0x37   :  { %p3134_p12 = pnand %p3132_p11, %p3129_p10 }
  0x39   :  { %3137 = shalt.err (!%p3134_p12)
}
  0x3a   :  { %s3138_s25 = scalar_lea.vmem %s3273_s22, 32  ;;  %p3143_p0 = scmp.lt.s32.totalorder %s3273_s22, %s3273_s22 }
  0x3b   :  { %p3139_p13 = scmp.ne.s32.totalorder %s3273_s22, %s3138_s25  ;;  %p3144_p1 = scmp.lt.s32.totalorder %s3138_s25, %s3138_s25 }
  0x3d   :  { %p3145_p2 = por %p3144_p1, %p3143_p0 }
  0x3f   :  { %p3146_p3 = pnand %p3145_p2, %p3139_p13 }
  0x41   :  { %3149 = shalt.err (!%p3146_p3)
}
  0x42   :  { %s3162_s5 = smov 16   ;;  %s3163_s20 = smov 1  }
  0x43   :  { %80 = dma.hbm_to_vmem [thread:$0]  %s4012_s9, 32, %s3273_s22, [#allocation8], %s3162_s5, %s3162_s5, %s3163_s20  }
  0x44   :  { %3150 = dma.done.wait [#allocation3], 256  }
  0x45   :  { %3151 = vsyncadd [#allocation3], 4294967040 }
  0x46   :  { %3152 = dma.done.wait [#allocation5], 1280  }
  0x47   :  { %3153 = vsyncadd [#allocation5], 4294966016 }
  0x48   :  { %3154 = dma.done.wait [#allocation8], 32  }
  0x49   :  { %3155 = vsyncadd [#allocation8], 4294967264  ;;  %v3310_v0 = vld [vmem:[%s4003_s0] sm:$0xff]  ;;  %vm126_vm0 = vcmask 523264   ;;  %v3315_v1 = vld [vmem:[%s4003_s0 + $0x8] sm:$0xff]  ;;  %v3164_v28 = vmov 0.0  }
  0x4a   :  { %v124_v2 = vmul.f32 %v3310_v0, %v3310_v0  ;;  %v125_v3 = vmul.f32 %v3315_v1, %v3315_v1  ;;  %v151_v6 = vld [vmem:[%s4010_s7 + $0x8] sm:$0xff]  ;;  %v154_v7 = vld [vmem:[%s4010_s7 + $0x20] sm:$0xff]  ;;  %v153_v10 = vld [vmem:[%s4010_s7 + $0x18] sm:$0xff]  ;;  %244 = vmatprep.mubr.f32.mxu0 %v3164_v28  ;;  %s3165_s19 = smov 64   ;;  %vm501_vm2 = vcmask 130048  }
  0x4b   :  { %v2690_v8 = vpack.c.bf16 %v154_v7, %v151_v6  ;;  %v150_v9 = vld [vmem:[%s4010_s7] sm:$0xff]  ;;  %v157_v12 = vld [vmem:[%s4010_s7 + $0x38] sm:$0xff]  ;;  %v160_v13 = vld [vmem:[%s4010_s7 + $0x50] sm:$0xff] }
  0x4c   :  { %v127_v4 = vsel %vm126_vm0, %v124_v2, 0.0  ;;  %v130_v5 = vsel %vm126_vm0, %v125_v3, 0.0  ;;  %v2692_v11 = vpack.c.bf16 %v153_v10, %v150_v9  ;;  %v2694_v14 = vpack.c.bf16 %v160_v13, %v157_v12  ;;  %v156_v15 = vld [vmem:[%s4010_s7 + $0x30] sm:$0xff]  ;;  %v159_v16 = vld [vmem:[%s4010_s7 + $0x48] sm:$0xff]  ;;  %v166_v19 = vld [vmem:[%s4010_s7 + $0x80] sm:$0xff] }
  0x4d   :  { %128 = vadd.xlane.f32.xlu0 %v127_v4  ;;  %2691 = vmatprep.subr.bf16.mxu0 %v2690_v8  ;;  %v2696_v17 = vpack.c.bf16 %v159_v16, %v156_v15  ;;  %v163_v18 = vld [vmem:[%s4010_s7 + $0x68] sm:$0xff]  ;;  %v162_v21 = vld [vmem:[%s4010_s7 + $0x60] sm:$0xff]  ;;  %v165_v22 = vld [vmem:[%s4010_s7 + $0x78] sm:$0xff] }
  0x4e   :  { %2693 = vmatpush1.bf16.msra.mxu0 %v2692_v11  ;;  %v2698_v20 = vpack.c.bf16 %v166_v19, %v163_v18  ;;  %v169_v23 = vld [vmem:[%s4010_s7 + $0x98] sm:$0xff]  ;;  %v2700_v24 = vpack.c.bf16 %v165_v22, %v162_v21  ;;  %v172_v25 = vld [vmem:[%s4010_s7 + $0xb0] sm:$0xff]  ;;  %v171_v27 = vld [vmem:[%s4010_s7 + $0xa8] sm:$0xff] }
  0x4f   :  { %2695 = vmatprep.subr.bf16.mxu0 %v2694_v14  ;;  %v168_v26 = vld [vmem:[%s4010_s7 + $0x90] sm:$0xff]  ;;  %v2702_v29 = vpack.c.bf16 %v172_v25, %v169_v23  ;;  %v155_v31 = vld [vmem:[%s4010_s7 + $0x28] sm:$0xff]  ;;  %v2176_v41 = vld [vmem:[%s4009_s6] ss:$0 sm:$0xff] }
  0x50   :  { %v152_v30 = vld [vmem:[%s4010_s7 + $0x10] sm:$0xff]  ;;  %v2704_v32 = vpack.c.bf16 %v171_v27, %v168_v26  ;;  %v158_v42 = vld [vmem:[%s4010_s7 + $0x40] sm:$0xff]  ;;  %v161_v43 = vld [vmem:[%s4010_s7 + $0x58] sm:$0xff] }
  0x51   :  { %131 = vadd.xlane.f32.xlu0 %v130_v5  ;;  %v2706_v33 = vpack.c.bf16 %v155_v31, %v152_v30  ;;  %v2710_v46 = vpack.c.bf16 %v161_v43, %v158_v42  ;;  %v164_v48 = vld [vmem:[%s4010_s7 + $0x70] sm:$0xff]  ;;  %v167_v49 = vld [vmem:[%s4010_s7 + $0x88] sm:$0xff]  ;;  %v170_v53 = vld [vmem:[%s4010_s7 + $0xa0] sm:$0xff] }
  0x52   :  { %2697 = vmatpush1.bf16.msra.mxu0 %v2696_v17  ;;  %v2714_v52 = vpack.c.bf16 %v167_v49, %v164_v48  ;;  %v173_v54 = vld [vmem:[%s4010_s7 + $0xb8] sm:$0xff]  ;;  %v3406_v56 = vld [vmem:[#allocation2] sm:$0xff]  ;;  %v3415_v62 = vld [vmem:[#allocation2 + $0x8] sm:$0xff] }
  0x53   :  { %2699 = vmatprep.subr.bf16.mxu0 %v2698_v20  ;;  %v2718_v55 = vpack.c.bf16 %v173_v54, %v170_v53  ;;  %v3411_v57 = vld [vmem:[%s4006_s3] sm:$0xff]  ;;  %v3420_v63 = vld [vmem:[%s4006_s3 + $0x8] sm:$0xff]  ;;  %v3422_v2 = vld [vmem:[#allocation4] sm:$0xff] }
  0x54   :  { %vm3431_vm1 = vmpackc.low %vm126_vm0, %vm126_vm0  ;;  %v3439_v19 = vld [vmem:[#allocation4 + $0x8] sm:$0xff]  ;;  %v3441_v20 = vld [vmem:[#allocation4 + $0x10] sm:$0xff] }
  0x55   :  { %v3445_v23 = vld [vmem:[#allocation4 + $0x18] sm:$0xff]  ;;  %v3453_v27 = vld [vmem:[#allocation4 + $0x28] sm:$0xff]  ;;  %v3489_v49 = vld [vmem:[%s4004_s1 + $0x10] sm:$0xff] }
  0x56   :  { %2701 = vmatpush1.bf16.msra.mxu0 %v2700_v24  ;;  %v3448_v24 = vld [vmem:[#allocation4 + $0x20] sm:$0xff]  ;;  %v3482_v43 = vld [vmem:[%s4004_s1 + $0x18] sm:$0xff] }
  0x57   :  { %2703 = vmatprep.subr.bf16.mxu0 %v2702_v29  ;;  %v3456_v29 = vld [vmem:[#allocation4 + $0x30] sm:$0xff] }
  0x5a   :  { %2705 = vmatpush1.bf16.msra.mxu0 %v2704_v32  ;;  %v3461_v32 = vld [vmem:[#allocation4 + $0x38] sm:$0xff] }
  0x5b   :  { %2707 = vmatprep.subr.bf16.mxu0 %v2706_v33 }
  0xda   :  { %v129_v34 = vpop.xlane.xlu0 %128 }
  0xdb   :  { %v134_v35 = vmul.f32 0.015625, %v129_v34 }
  0xdd   :  { %v136_v36 = vadd.f32 1e-06, %v134_v35  ;;  %v3470_v35 = vld [vmem:[%s4004_s1 + $0x8] sm:$0xff] }
  0xde   :  { %v132_v37 = vpop.xlane.xlu0 %131 }
  0xdf   :  { %2954 = vrsqrt.f32 %v136_v36  ;;  %v135_v38 = vmul.f32 0.015625, %v132_v37 }
  0xe1   :  { %v137_v39 = vadd.f32 1e-06, %v135_v38  ;;  %v3475_v38 = vld [vmem:[%s4004_s1] sm:$0xff] }
  0xe3   :  { %2956 = vrsqrt.f32 %v137_v39 }
  0xe9   :  { %v2955_v40 = vpop.eup %2954 }
  0xea   :  { %v140_v44 = vmul.f32 %v2955_v40, %v3310_v0 }
  0xec   :  { %v148_v45 = vmul.f32 %v2176_v41, %v140_v44 }
  0xed   :  { %v2957_v47 = vpop.eup %2956 }
  0xee   :  { %2177 = vmatmul.mubr.msk.f32.vlgmr.msra.gmra.mrb[0].mxu0 %vm126_vm0, %v148_v45  ;;  %v141_v50 = vmul.f32 %v2957_v47, %v3315_v1 }
  0xef   :  { %2709 = vmatpush3.bf16.msra.mxu0 %v2706_v33  ;;  %250 = vmatprep.mubr.f32.mxu0 %v3164_v28 }
  0xf0   :  { %2711 = vmatprep.subr.bf16.mxu0 %v2710_v46  ;;  %v149_v51 = vmul.f32 %v2176_v41, %v141_v50 }
  0xf2   :  { %2178 = vmatmul.mubr.msk.f32.gmra.mrb[2].mxu0 %vm126_vm0, %v149_v51 }
  0xf3   :  { %2713 = vmatpush3.bf16.msra.mxu0 %v2710_v46  ;;  %2458 = vmatprep.mubr.msk.f32.mxu0 %vm126_vm0, %v148_v45 }
  0xf4   :  { %2715 = vmatprep.subr.bf16.mxu0 %v2714_v52 }
  0xf7   :  { %2717 = vmatpush3.bf16.msra.mxu0 %v2714_v52 }
  0xf8   :  { %2719 = vmatprep.subr.bf16.mxu0 %v2718_v55 }
  0xfb   :  { %2721 = vmatpush3.bf16.msra.mxu0 %v2718_v55 }
  0xfe   :  { %2459 = vmatmul.mubr.msk.f32.vlgmr.msra.gmra.mrb[4].mxu0 %vm126_vm0, %v149_v51 }
 0x1c1   :  { %v246_v58 = vpop.f32.mrb[0].mxu0 }
 0x1c2   :  { %v332_v59 = vmul.f32 %v246_v58, %v3406_v56  ;;  %v248_v60 = vpop.f32.mrb[1].mxu0  ;;  %v3497_v58 = vld [vmem:[%s4004_s1 + $0x28] sm:$0xff] }
 0x1c3   :  { %v334_v61 = vmul.f32 %v248_v60, %v3411_v57 }
 0x1c5   :  { %v336_v3 = vadd.f32 %v334_v61, %v332_v59  ;;  %v252_v4 = vpop.f32.mrb[2].mxu0 }
 0x1c6   :  { %v333_v5 = vmul.f32 %v252_v4, %v3415_v62  ;;  %v254_v6 = vpop.f32.mrb[3].mxu0 }
 0x1c7   :  { %v335_v7 = vmul.f32 %v254_v6, %v3420_v63  ;;  %v338_v8 = vmul.f32 %v336_v3, %v3422_v2  ;;  %v340_v22 = vmul.f32 %v336_v3, %v3441_v20  ;;  %v342_v26 = vmul.f32 %v336_v3, %v3448_v24 }
 0x1c8   :  { %v344_v31 = vmul.f32 %v336_v3, %v3456_v29 }
 0x1c9   :  { %v337_v9 = vadd.f32 %v335_v7, %v333_v5  ;;  %2465 = vmatprep.mubr.msk.f32.mxu0 %vm126_vm0, %v338_v8  ;;  %v3504_v5 = vld [vmem:[%s4004_s1 + $0x20] sm:$0xff] }
 0x1cb   :  { %v2944_v10 = vpack.i.bf16 %v337_v9, %v336_v3  ;;  %v339_v21 = vmul.f32 %v337_v9, %v3439_v19  ;;  %v341_v25 = vmul.f32 %v337_v9, %v3445_v23  ;;  %v343_v30 = vmul.f32 %v337_v9, %v3453_v27 }
 0x1cc   :  { %v345_v33 = vmul.f32 %v337_v9, %v3461_v32  ;;  %v3511_v9 = vld [vmem:[%s4004_s1 + $0x30] sm:$0xff] }
 0x1cd   :  { %2945 = vrot.lane.b32.xlu1 %v2944_v10, %s3165_s19 }
 0x1d1   :  { %v2460_v11 = vpop.f32.mrb[4].mxu0 }
 0x1d2   :  { %v323_v12 = vpop.f32.mrb[5].mxu0 }
 0x1d3   :  { %v2728_v13 = vpack.c.bf16 %v2460_v11, %v323_v12 }
 0x1d5   :  { %2729 = vmatprep.subr.bf16.mxu1 %v2728_v13 }
 0x1d6   :  { %2731 = vmatpush3.bf16.msra.mxu1 %v2728_v13  ;;  %v3518_v13 = vld [vmem:[%s4004_s1 + $0x38] sm:$0xff] }
 0x23f   :  { %v2946_v14 = vpop.permute.xlu1 %2945 }
 0x240   :  { %v2948_v15 = vunpack.i.h.bf16 %v2946_v14  ;;  %v2947_v16 = vunpack.i.l.bf16 %v2946_v14 }
 0x242   :  { %v2722_v18 = vpack.c.bf16 %v2948_v15, %v2947_v16 }
 0x244   :  { %2724 = vmatprep.subr.msk.bf16.mxu0 %vm3431_vm1, %v2722_v18 }
 0x245   :  { %2727 = vmatpush3.bf16.xpose.msk.msra.mxu0 %vm3431_vm1, %v2722_v18 }
 0x24c   :  { %2466 = vmatmul.mubr.msk.f32.vlgmr.msra.gmra.mrb[6].mxu0 %vm126_vm0, %v339_v21 }
 0x24d   :  { %2468 = vmatprep.mubr.msk.f32.mxu0 %vm126_vm0, %v340_v22 }
 0x250   :  { %2469 = vmatmul.mubr.msk.f32.gmra.mrb[8].mxu0 %vm126_vm0, %v341_v25 }
 0x251   :  { %2471 = vmatprep.mubr.msk.f32.mxu0 %vm126_vm0, %v342_v26 }
 0x254   :  { %2472 = vmatmul.mubr.msk.f32.gmra.mrb[10].mxu0 %vm126_vm0, %v343_v30 }
 0x255   :  { %2474 = vmatprep.mubr.msk.f32.mxu0 %vm126_vm0, %v344_v31 }
 0x258   :  { %2475 = vmatmul.mubr.msk.f32.gmra.mrb[12].mxu0 %vm126_vm0, %v345_v33 }
 0x31f   :  { %v2467_v34 = vpop.f32.mrb[6].mxu0 }
 0x320   :  { %v486_v36 = vmul.f32 0.25, %v2467_v34  ;;  %v446_v37 = vpop.f32.mrb[7].mxu0 }
 0x321   :  { %v485_v39 = vmul.f32 0.25, %v446_v37 }
 0x322   :  { %v494_v40 = vadd.f32 %v486_v36, %v3470_v35 }
 0x323   :  { %v2470_v41 = vpop.f32.mrb[8].mxu0  ;;  %v493_v42 = vadd.f32 %v485_v39, %v3475_v38 }
 0x324   :  { %v488_v44 = vmul.f32 0.25, %v2470_v41  ;;  %v456_v45 = vpop.f32.mrb[9].mxu0  ;;  %v505_v46 = vsel %vm501_vm2, %v494_v40, -inf }
 0x325   :  { %v487_v47 = vmul.f32 0.25, %v456_v45  ;;  %506 = vmax.xlane.f32.xlu0 %v505_v46  ;;  %v502_v48 = vsel %vm501_vm2, %v493_v42, -inf }
 0x326   :  { %503 = vmax.xlane.f32.xlu1 %v502_v48  ;;  %v496_v50 = vadd.f32 %v488_v44, %v3482_v43 }
 0x327   :  { %v2473_v51 = vpop.f32.mrb[10].mxu0  ;;  %v495_v55 = vadd.f32 %v487_v47, %v3489_v49 }
 0x328   :  { %v490_v52 = vmul.f32 0.25, %v2473_v51  ;;  %v466_v53 = vpop.f32.mrb[11].mxu0  ;;  %v511_v54 = vsel %vm501_vm2, %v496_v50, -inf }
 0x329   :  { %512 = vmax.xlane.f32.xlu0 %v511_v54  ;;  %v489_v60 = vmul.f32 0.25, %v466_v53  ;;  %v508_v3 = vsel %vm501_vm2, %v495_v55, -inf }
 0x32a   :  { %v498_v4 = vadd.f32 %v490_v52, %v3497_v58 }
 0x32b   :  { %v2476_v59 = vpop.f32.mrb[12].mxu0  ;;  %v497_v8 = vadd.f32 %v489_v60, %v3504_v5 }
 0x32c   :  { %v476_v61 = vpop.f32.mrb[13].mxu0  ;;  %v517_v7 = vsel %vm501_vm2, %v498_v4, -inf  ;;  %v492_v10 = vmul.f32 0.25, %v2476_v59 }
 0x32d   :  { %509 = vmax.xlane.f32.xlu0 %v508_v3  ;;  %v491_v6 = vmul.f32 0.25, %v476_v61  ;;  %v514_v11 = vsel %vm501_vm2, %v497_v8, -inf }
 0x32e   :  { %v500_v15 = vadd.f32 %v492_v10, %v3518_v13 }
 0x32f   :  { %v499_v12 = vadd.f32 %v491_v6, %v3511_v9 }
 0x330   :  { %v523_v16 = vsel %vm501_vm2, %v500_v15, -inf }
 0x331   :  { %518 = vmax.xlane.f32.xlu0 %v517_v7  ;;  %v520_v14 = vsel %vm501_vm2, %v499_v12, -inf }
 0x335   :  { %515 = vmax.xlane.f32.xlu0 %v514_v11 }
 0x339   :  { %521 = vmax.xlane.f32.xlu0 %v520_v14 }
 0x33d   :  { %524 = vmax.xlane.f32.xlu0 %v523_v16 }
 0x3b2   :  { %v507_v18 = vpop.xlane.xlu0 %506 }
 0x3b3   :  { %v527_v21 = vsub.f32 %v494_v40, %v507_v18  ;;  %v504_v22 = vpop.xlane.xlu1 %503 }
 0x3b4   :  { %v526_v25 = vsub.f32 %v493_v42, %v504_v22 }
 0x3b5   :  { %v536_v26 = vmul.f32 1.442695, %v527_v21 }
 0x3b6   :  { %v534_v30 = vmul.f32 1.442695, %v526_v25  ;;  %v513_v31 = vpop.xlane.xlu0 %512 }
 0x3b7   :  { %v529_v33 = vsub.f32 %v496_v50, %v513_v31 }
 0x3b8   :  { %2958 = vpow2.f32 %v534_v30 }
 0x3b9   :  { %2960 = vpow2.f32 %v536_v26  ;;  %v540_v34 = vmul.f32 1.442695, %v529_v33 }
 0x3ba   :  { %v510_v36 = vpop.xlane.xlu0 %509 }
 0x3bb   :  { %v528_v37 = vsub.f32 %v495_v55, %v510_v36  ;;  %2962 = vpow2.f32 %v540_v34 }
 0x3bd   :  { %v538_v39 = vmul.f32 1.442695, %v528_v37 }
 0x3be   :  { %v519_v41 = vpop.xlane.xlu0 %518 }
 0x3bf   :  { %2964 = vpow2.f32 %v538_v39  ;;  %v531_v44 = vsub.f32 %v498_v4, %v519_v41 }
 0x3c1   :  { %v544_v45 = vmul.f32 1.442695, %v531_v44 }
 0x3c2   :  { %v2959_v46 = vpop.eup %2958  ;;  %v516_v47 = vpop.xlane.xlu0 %515 }
 0x3c3   :  { %2966 = vpow2.f32 %v544_v45  ;;  %v530_v40 = vsub.f32 %v497_v8, %v516_v47  ;;  %v550_v42 = vsel %vm501_vm2, %v2959_v46, 0.0  ;;  %v2961_v48 = vpop.eup %2960 }
 0x3c4   :  { %551 = vadd.xlane.f32.xlu0 %v550_v42  ;;  %v553_v53 = vsel %vm501_vm2, %v2961_v48, 0.0 }
 0x3c5   :  { %v542_v50 = vmul.f32 1.442695, %v530_v40  ;;  %v2963_v54 = vpop.eup %2962 }
 0x3c6   :  { %v522_v51 = vpop.xlane.xlu0 %521  ;;  %v559_v4 = vsel %vm501_vm2, %v2963_v54, 0.0 }
 0x3c7   :  { %2968 = vpow2.f32 %v542_v50  ;;  %v532_v52 = vsub.f32 %v499_v12, %v522_v51 }
 0x3c8   :  { %554 = vadd.xlane.f32.xlu0 %v553_v53 }
 0x3c9   :  { %v2965_v55 = vpop.eup %2964  ;;  %v546_v59 = vmul.f32 1.442695, %v532_v52 }
 0x3ca   :  { %v525_v60 = vpop.xlane.xlu0 %524  ;;  %v556_v61 = vsel %vm501_vm2, %v2965_v55, 0.0 }
 0x3cb   :  { %2970 = vpow2.f32 %v546_v59  ;;  %v533_v3 = vsub.f32 %v500_v15, %v525_v60  ;;  %557 = vadd.xlane.f32.xlu1 %v556_v61  ;;  %v809_v59 = vld [vmem:[%s4011_s8 + $0x8] sm:$0xff]  ;;  %v810_v60 = vld [vmem:[%s4011_s8 + $0x10] sm:$0xff] }
 0x3cc   :  { %560 = vadd.xlane.f32.xlu0 %v559_v4 }
 0x3cd   :  { %v2967_v6 = vpop.eup %2966  ;;  %v548_v7 = vmul.f32 1.442695, %v533_v3  ;;  %v811_v3 = vld [vmem:[%s4011_s8 + $0x18] sm:$0xff] }
 0x3ce   :  { %v565_v8 = vsel %vm501_vm2, %v2967_v6, 0.0  ;;  %v2752_v4 = vpack.c.bf16 %v811_v3, %v810_v60 }
 0x3cf   :  { %2972 = vpow2.f32 %v548_v7  ;;  %v813_v7 = vld [vmem:[%s4011_s8 + $0x28] sm:$0xff] }
 0x3d0   :  { %566 = vadd.xlane.f32.xlu0 %v565_v8 }
 0x3d1   :  { %v2969_v10 = vpop.eup %2968 }
 0x3d2   :  { %v562_v11 = vsel %vm501_vm2, %v2969_v10, 0.0 }
 0x3d3   :  { %563 = vadd.xlane.f32.xlu1 %v562_v11  ;;  %v815_v11 = vld [vmem:[%s4011_s8 + $0x38] sm:$0xff] }
 0x3d5   :  { %v2971_v12 = vpop.eup %2970 }
 0x3d6   :  { %v568_v14 = vsel %vm501_vm2, %v2971_v12, 0.0 }
 0x3d7   :  { %569 = vadd.xlane.f32.xlu1 %v568_v14 }
 0x3d9   :  { %v2973_v16 = vpop.eup %2972 }
 0x3da   :  { %v571_v15 = vsel %vm501_vm2, %v2973_v16, 0.0 }
 0x3db   :  { %572 = vadd.xlane.f32.xlu0 %v571_v15 }
 0x451   :  { %v552_v18 = vpop.xlane.xlu0 %551 }
 0x452   :  { %2974 = vrcp.f32 %v552_v18 }
 0x455   :  { %v555_v21 = vpop.xlane.xlu0 %554 }
 0x456   :  { %2976 = vrcp.f32 %v555_v21 }
 0x458   :  { %v558_v22 = vpop.xlane.xlu1 %557 }
 0x459   :  { %2978 = vrcp.f32 %v558_v22  ;;  %v561_v25 = vpop.xlane.xlu0 %560 }
 0x45a   :  { %2980 = vrcp.f32 %v561_v25 }
 0x45c   :  { %v2975_v26 = vpop.eup %2974 }
 0x45d   :  { %v567_v30 = vpop.xlane.xlu0 %566  ;;  %v582_v31 = vmul.f32 %v2975_v26, %v2959_v46 }
 0x45e   :  { %2982 = vrcp.f32 %v567_v30 }
 0x45f   :  { %2481 = vmatprep.mubr.msk.f32.mxu1 %vm501_vm2, %v582_v31 }
 0x460   :  { %v2977_v33 = vpop.eup %2976  ;;  %v564_v34 = vpop.xlane.xlu1 %563 }
 0x461   :  { %2984 = vrcp.f32 %v564_v34  ;;  %v583_v36 = vmul.f32 %v2977_v33, %v2961_v48 }
 0x463   :  { %v2979_v37 = vpop.eup %2978  ;;  %2482 = vmatmul.mubr.msk.f32.vlgmr.msra.gmra.mrb[0].mxu1 %vm501_vm2, %v583_v36 }
 0x464   :  { %v2981_v39 = vpop.eup %2980  ;;  %v570_v41 = vpop.xlane.xlu1 %569  ;;  %v584_v44 = vmul.f32 %v2979_v37, %v2965_v55  ;;  %v808_v55 = vld [vmem:[%s4011_s8] sm:$0xff] }
 0x465   :  { %2986 = vrcp.f32 %v570_v41  ;;  %v585_v45 = vmul.f32 %v2981_v39, %v2963_v54  ;;  %v3539_v54 = vld [vmem:[#allocation6] sm:$0xff]  ;;  %v2748_v61 = vpack.c.bf16 %v809_v59, %v808_v55 }
 0x466   :  { %2484 = vmatprep.mubr.msk.f32.mxu1 %vm501_vm2, %v584_v44 }
 0x467   :  { %2485 = vmatmul.mubr.msk.f32.gmra.mrb[2].mxu1 %vm501_vm2, %v585_v45  ;;  %2749 = vmatprep.subr.bf16.mxu0 %v2748_v61 }
 0x468   :  { %v573_v46 = vpop.xlane.xlu0 %572  ;;  %v2983_v47 = vpop.eup %2982  ;;  %2751 = vmatpush3.bf16.msra.mxu0 %v2748_v61 }
 0x469   :  { %2988 = vrcp.f32 %v573_v46  ;;  %v587_v50 = vmul.f32 %v2983_v47, %v2967_v6  ;;  %v812_v6 = vld [vmem:[%s4011_s8 + $0x20] sm:$0xff]  ;;  %2753 = vmatprep.subr.bf16.mxu0 %v2752_v4 }
 0x46a   :  { %v2756_v8 = vpack.c.bf16 %v813_v7, %v812_v6  ;;  %v926_v6 = vld [vmem:[%s4013_s10 + $0x10] sm:$0xff] }
 0x46b   :  { %v2985_v40 = vpop.eup %2984 }
 0x46c   :  { %v586_v42 = vmul.f32 %v2985_v40, %v2969_v10  ;;  %v814_v10 = vld [vmem:[%s4011_s8 + $0x30] sm:$0xff]  ;;  %2755 = vmatpush3.bf16.msra.mxu0 %v2752_v4  ;;  %v3575_v40 = vld [vmem:[#allocation6 + $0x8] sm:$0xff]  ;;  %v924_v4 = vld [vmem:[%s4013_s10] sm:$0xff] }
 0x46d   :  { %2757 = vmatprep.subr.bf16.mxu0 %v2756_v8  ;;  %v2766_v7 = vpack.c.bf16 %v926_v6, %v924_v4  ;;  %v1042_v4 = vld [vmem:[%s4014_s11 + $0x18] sm:$0xff] }
 0x46e   :  { %2487 = vmatprep.mubr.msk.f32.mxu1 %vm501_vm2, %v586_v42 }
 0x46f   :  { %v2987_v48 = vpop.eup %2986  ;;  %2488 = vmatmul.mubr.msk.f32.gmra.mrb[4].mxu1 %vm501_vm2, %v587_v50 }
 0x470   :  { %v588_v51 = vmul.f32 %v2987_v48, %v2971_v12  ;;  %v2760_v12 = vpack.c.bf16 %v815_v11, %v814_v10  ;;  %2759 = vmatpush3.bf16.msra.mxu0 %v2756_v8  ;;  %v929_v8 = vld [vmem:[%s4013_s10 + $0x28] sm:$0xff]  ;;  %v931_v10 = vld [vmem:[%s4013_s10 + $0x38] sm:$0xff] }
 0x471   :  { %v2768_v11 = vpack.c.bf16 %v931_v10, %v929_v8  ;;  %v1044_v8 = vld [vmem:[%s4014_s11 + $0x28] sm:$0xff] }
 0x472   :  { %2490 = vmatprep.mubr.msk.f32.mxu1 %vm501_vm2, %v588_v51  ;;  %2761 = vmatprep.subr.bf16.mxu0 %v2760_v12 }
 0x473   :  { %v2989_v52 = vpop.eup %2988 }
 0x474   :  { %v589_v53 = vmul.f32 %v2989_v52, %v2973_v16  ;;  %2763 = vmatpush3.bf16.msra.mxu0 %v2760_v12  ;;  %v928_v12 = vld [vmem:[%s4013_s10 + $0x20] sm:$0xff] }
 0x476   :  { %2491 = vmatmul.mubr.msk.f32.gmra.mrb[6].mxu1 %vm501_vm2, %v589_v53 }
 0x477   :  { %2509 = vmatprep.mubr.msk.f32.mxu1 %vm126_vm0, %v3539_v54 }
 0x536   :  { %v2483_v14 = vpop.f32.mrb[0].mxu1 }
 0x537   :  { %v720_v16 = vmul.f32 %v2483_v14, %v3439_v19  ;;  %v680_v15 = vpop.f32.mrb[1].mxu1  ;;  %v930_v14 = vld [vmem:[%s4013_s10 + $0x30] sm:$0xff] }
 0x538   :  { %v719_v18 = vmul.f32 %v680_v15, %v3422_v2  ;;  %v933_v15 = vld [vmem:[%s4013_s10 + $0x48] sm:$0xff] }
 0x53a   :  { %v2732_v21 = vpack.c.bf16 %v720_v16, %v719_v18  ;;  %v2486_v22 = vpop.f32.mrb[2].mxu1  ;;  %v2770_v16 = vpack.c.bf16 %v930_v14, %v928_v12  ;;  %v935_v18 = vld [vmem:[%s4013_s10 + $0x58] sm:$0xff] }
 0x53b   :  { %v722_v25 = vmul.f32 %v2486_v22, %v3445_v23  ;;  %v690_v26 = vpop.f32.mrb[3].mxu1  ;;  %v932_v22 = vld [vmem:[%s4013_s10 + $0x40] sm:$0xff]  ;;  %v1046_v12 = vld [vmem:[%s4014_s11 + $0x38] sm:$0xff] }
 0x53c   :  { %v721_v30 = vmul.f32 %v690_v26, %v3441_v20  ;;  %2733 = vmatprep.subr.bf16.mxu1 %v2732_v21 }
 0x53d   :  { %2735 = vmatpush3.bf16.msra.mxu1 %v2732_v21  ;;  %v2772_v21 = vpack.c.bf16 %v935_v18, %v933_v15  ;;  %v1048_v15 = vld [vmem:[%s4014_s11 + $0x48] sm:$0xff] }
 0x53e   :  { %v2736_v31 = vpack.c.bf16 %v722_v25, %v721_v30  ;;  %v934_v25 = vld [vmem:[%s4013_s10 + $0x50] sm:$0xff]  ;;  %v937_v30 = vld [vmem:[%s4013_s10 + $0x68] sm:$0xff] }
 0x53f   :  { %v2774_v26 = vpack.c.bf16 %v934_v25, %v932_v22  ;;  %v1050_v22 = vld [vmem:[%s4014_s11 + $0x58] sm:$0xff] }
 0x540   :  { %2737 = vmatprep.subr.bf16.mxu1 %v2736_v31 }
 0x541   :  { %2739 = vmatpush3.bf16.msra.mxu1 %v2736_v31  ;;  %v939_v31 = vld [vmem:[%s4013_s10 + $0x78] sm:$0xff] }
 0x542   :  { %v2489_v33 = vpop.f32.mrb[4].mxu1 }
 0x543   :  { %v724_v34 = vmul.f32 %v2489_v33, %v3453_v27  ;;  %v700_v36 = vpop.f32.mrb[5].mxu1  ;;  %v2776_v33 = vpack.c.bf16 %v939_v31, %v937_v30  ;;  %v1052_v30 = vld [vmem:[%s4014_s11 + $0x68] sm:$0xff] }
 0x544   :  { %v723_v37 = vmul.f32 %v700_v36, %v3448_v24  ;;  %v938_v36 = vld [vmem:[%s4013_s10 + $0x70] sm:$0xff] }
 0x546   :  { %v2740_v39 = vpack.c.bf16 %v724_v34, %v723_v37  ;;  %v936_v34 = vld [vmem:[%s4013_s10 + $0x60] sm:$0xff] }
 0x547   :  { %v2778_v37 = vpack.c.bf16 %v938_v36, %v936_v34  ;;  %v1054_v34 = vld [vmem:[%s4014_s11 + $0x78] sm:$0xff] }
 0x548   :  { %2741 = vmatprep.subr.bf16.mxu1 %v2740_v39 }
 0x549   :  { %v2492_v41 = vpop.f32.mrb[6].mxu1  ;;  %2743 = vmatpush3.bf16.msra.mxu1 %v2740_v39 }
 0x54a   :  { %v726_v44 = vmul.f32 %v2492_v41, %v3461_v32  ;;  %v710_v45 = vpop.f32.mrb[7].mxu1 }
 0x54b   :  { %v725_v46 = vmul.f32 %v710_v45, %v3456_v29 }
 0x54d   :  { %v2744_v47 = vpack.c.bf16 %v726_v44, %v725_v46 }
 0x54f   :  { %2745 = vmatprep.subr.bf16.mxu1 %v2744_v47 }
 0x550   :  { %2747 = vmatpush3.bf16.msra.mxu1 %v2744_v47 }
 0x553   :  { %2510 = vmatmul.mubr.msk.f32.vlgmr.msra.gmra.mrb[8].mxu1 %vm126_vm0, %v3575_v40 }
 0x554   :  { %1010 = vmatprep.mubr.f32.mxu1 %v3164_v28 }
 0x626   :  { %v2511_v42 = vpop.f32.mrb[8].mxu1 }
 0x627   :  { %v799_v50 = vpop.f32.mrb[9].mxu1 }
 0x628   :  { %2528 = vmatprep.mubr.msk.f32.mxu0 %vm126_vm0, %v799_v50 }
 0x629   :  { %2529 = vmatmul.mubr.msk.f32.vlgmr.msra.gmra.mrb[14].mxu0 %vm126_vm0, %v2511_v42 }
 0x6fc   :  { %v2530_v48 = vpop.f32.mrb[14].mxu0 }
 0x6fd   :  { %v3583_v51 = vadd.f32 %v2530_v48, %v3315_v1  ;;  %v888_v52 = vpop.f32.mrb[15].mxu0  ;;  %v925_v1 = vld [vmem:[%s4013_s10 + $0x8] sm:$0xff]  ;;  %v2203_v48 = vld [vmem:[#allocation7] ss:$0 sm:$0xff] }
 0x6fe   :  { %v3586_v53 = vadd.f32 %v888_v52, %v3310_v0  ;;  %v927_v0 = vld [vmem:[%s4013_s10 + $0x18] sm:$0xff] }
 0x6ff   :  { %v901_v55 = vmul.f32 %v3583_v51, %v3583_v51  ;;  %v2764_v3 = vpack.c.bf16 %v927_v0, %v925_v1  ;;  %v1040_v1 = vld [vmem:[%s4014_s11 + $0x8] sm:$0xff] }
 0x700   :  { %v900_v59 = vmul.f32 %v3586_v53, %v3586_v53 }
 0x701   :  { %v905_v60 = vsel %vm126_vm0, %v901_v55, 0.0  ;;  %2765 = vmatprep.subr.bf16.mxu1 %v2764_v3  ;;  %v1041_v3 = vld [vmem:[%s4014_s11 + $0x10] sm:$0xff] }
 0x702   :  { %906 = vadd.xlane.f32.xlu0 %v905_v60  ;;  %v902_v61 = vsel %vm126_vm0, %v900_v59, 0.0  ;;  %2767 = vmatpush1.bf16.msra.mxu1 %v2766_v7  ;;  %v2784_v6 = vpack.c.bf16 %v1042_v4, %v1041_v3  ;;  %v1043_v7 = vld [vmem:[%s4014_s11 + $0x20] sm:$0xff] }
 0x703   :  { %903 = vadd.xlane.f32.xlu1 %v902_v61  ;;  %2769 = vmatprep.subr.bf16.mxu1 %v2768_v11  ;;  %v1039_v61 = vld [vmem:[%s4014_s11] sm:$0xff]  ;;  %v2788_v10 = vpack.c.bf16 %v1044_v8, %v1043_v7  ;;  %v1045_v11 = vld [vmem:[%s4014_s11 + $0x30] sm:$0xff] }
 0x704   :  { %v2780_v0 = vpack.c.bf16 %v1040_v1, %v1039_v61  ;;  %v2792_v14 = vpack.c.bf16 %v1046_v12, %v1045_v11 }
 0x706   :  { %2771 = vmatpush1.bf16.msra.mxu1 %v2770_v16  ;;  %2781 = vmatprep.subr.bf16.mxu0 %v2780_v0  ;;  %v1047_v16 = vld [vmem:[%s4014_s11 + $0x40] sm:$0xff] }
 0x707   :  { %2773 = vmatprep.subr.bf16.mxu1 %v2772_v21  ;;  %2783 = vmatpush3.bf16.msra.mxu0 %v2780_v0  ;;  %v2796_v18 = vpack.c.bf16 %v1048_v15, %v1047_v16  ;;  %v1049_v21 = vld [vmem:[%s4014_s11 + $0x50] sm:$0xff]  ;;  %v2213_v16 = vld [vmem:[%s4010_s7 + $0xd8] sm:$0xff] }
 0x708   :  { %2785 = vmatprep.subr.bf16.mxu0 %v2784_v6  ;;  %v2800_v25 = vpack.c.bf16 %v1050_v22, %v1049_v21  ;;  %v2220_v21 = vld [vmem:[%s4010_s7 + $0x110] sm:$0xff] }
 0x70a   :  { %2775 = vmatpush1.bf16.msra.mxu1 %v2774_v26  ;;  %v1051_v26 = vld [vmem:[%s4014_s11 + $0x60] sm:$0xff] }
 0x70b   :  { %2777 = vmatprep.subr.bf16.mxu1 %v2776_v33  ;;  %2787 = vmatpush3.bf16.msra.mxu0 %v2784_v6  ;;  %v2804_v31 = vpack.c.bf16 %v1052_v30, %v1051_v26  ;;  %v1053_v33 = vld [vmem:[%s4014_s11 + $0x70] sm:$0xff]  ;;  %v2219_v26 = vld [vmem:[%s4010_s7 + $0x108] sm:$0xff] }
 0x70c   :  { %2789 = vmatprep.subr.bf16.mxu0 %v2788_v10  ;;  %v2808_v36 = vpack.c.bf16 %v1054_v34, %v1053_v33  ;;  %v2226_v33 = vld [vmem:[%s4010_s7 + $0x140] sm:$0xff] }
 0x70e   :  { %2779 = vmatpush1.bf16.msra.mxu1 %v2778_v37 }
 0x70f   :  { %2791 = vmatpush3.bf16.msra.mxu0 %v2788_v10 }
 0x710   :  { %2793 = vmatprep.subr.bf16.mxu0 %v2792_v14 }
 0x713   :  { %2795 = vmatpush3.bf16.msra.mxu0 %v2792_v14  ;;  %v2210_v14 = vld [vmem:[%s4010_s7 + $0xc0] sm:$0xff] }
 0x714   :  { %2797 = vmatprep.subr.bf16.mxu0 %v2796_v18  ;;  %v2814_v15 = vpack.c.bf16 %v2213_v16, %v2210_v14  ;;  %v2224_v16 = vld [vmem:[%s4010_s7 + $0x130] sm:$0xff] }
 0x717   :  { %2799 = vmatpush3.bf16.msra.mxu0 %v2796_v18  ;;  %v2217_v18 = vld [vmem:[%s4010_s7 + $0xf8] sm:$0xff] }
 0x718   :  { %2801 = vmatprep.subr.bf16.mxu0 %v2800_v25  ;;  %v2816_v22 = vpack.c.bf16 %v2220_v21, %v2217_v18 }
 0x71b   :  { %2803 = vmatpush3.bf16.msra.mxu0 %v2800_v25  ;;  %v2216_v25 = vld [vmem:[%s4010_s7 + $0xf0] sm:$0xff] }
 0x71c   :  { %2805 = vmatprep.subr.bf16.mxu0 %v2804_v31  ;;  %v2818_v30 = vpack.c.bf16 %v2219_v26, %v2216_v25  ;;  %v2233_v25 = vld [vmem:[%s4010_s7 + $0x178] sm:$0xff] }
 0x71f   :  { %2807 = vmatpush3.bf16.msra.mxu0 %v2804_v31  ;;  %v2223_v31 = vld [vmem:[%s4010_s7 + $0x128] sm:$0xff] }
 0x720   :  { %2809 = vmatprep.subr.bf16.mxu0 %v2808_v36  ;;  %v2820_v34 = vpack.c.bf16 %v2226_v33, %v2223_v31 }
 0x723   :  { %2811 = vmatpush3.bf16.msra.mxu0 %v2808_v36  ;;  %v2222_v36 = vld [vmem:[%s4010_s7 + $0x120] sm:$0xff] }
 0x78f   :  { %v907_v39 = vpop.xlane.xlu0 %906 }
 0x790   :  { %v909_v41 = vmul.f32 0.015625, %v907_v39  ;;  %v904_v44 = vpop.xlane.xlu1 %903 }
 0x791   :  { %v908_v45 = vmul.f32 0.015625, %v904_v44 }
 0x792   :  { %v911_v46 = vadd.f32 1e-06, %v909_v41 }
 0x793   :  { %v910_v47 = vadd.f32 1e-06, %v908_v45 }
 0x794   :  { %2990 = vrsqrt.f32 %v911_v46 }
 0x795   :  { %2992 = vrsqrt.f32 %v910_v47 }
 0x79e   :  { %v2991_v42 = vpop.eup %2990 }
 0x79f   :  { %v2993_v50 = vpop.eup %2992  ;;  %v915_v59 = vmul.f32 %v2991_v42, %v3583_v51 }
 0x7a0   :  { %v914_v52 = vmul.f32 %v2993_v50, %v3586_v53 }
 0x7a1   :  { %v923_v60 = vmul.f32 %v2203_v48, %v915_v59 }
 0x7a2   :  { %v922_v55 = vmul.f32 %v2203_v48, %v914_v52 }
 0x7a4   :  { %2204 = vmatmul.mubr.msk.f32.vlgmr.msra.gmra.mrb[10].mxu1 %vm126_vm0, %v922_v55 }
 0x7a5   :  { %1016 = vmatprep.mubr.f32.mxu1 %v3164_v28 }
 0x7a8   :  { %2205 = vmatmul.mubr.msk.f32.gmra.mrb[12].mxu1 %vm126_vm0, %v923_v60 }
 0x7a9   :  { %1253 = vmatprep.mubr.f32.mxu1 %v3164_v28 }
 0x877   :  { %v1012_v37 = vpop.f32.mrb[10].mxu1 }
 0x878   :  { %v2206_v39 = vmul.f32 -1.442695, %v1012_v37  ;;  %v1014_v41 = vpop.f32.mrb[11].mxu1 }
 0x87a   :  { %2994 = vpow2.f32 %v2206_v39 }
 0x87b   :  { %v1018_v44 = vpop.f32.mrb[12].mxu1 }
 0x87c   :  { %v2207_v45 = vmul.f32 -1.442695, %v1018_v44  ;;  %v1020_v46 = vpop.f32.mrb[13].mxu1 }
 0x87e   :  { %2996 = vpow2.f32 %v2207_v45 }
 0x884   :  { %v2995_v47 = vpop.eup %2994 }
 0x885   :  { %v1029_v42 = vadd.f32 1.0, %v2995_v47  ;;  %v2231_v47 = vld [vmem:[%s4010_s7 + $0x168] sm:$0xff] }
 0x887   :  { %2998 = vrcp.f32 %v1029_v42 }
 0x888   :  { %v2997_v50 = vpop.eup %2996 }
 0x889   :  { %v1030_v48 = vadd.f32 1.0, %v2997_v50  ;;  %v2212_v50 = vld [vmem:[%s4010_s7 + $0xd0] sm:$0xff] }
 0x88b   :  { %3000 = vrcp.f32 %v1030_v48  ;;  %v2215_v48 = vld [vmem:[%s4010_s7 + $0xe8] sm:$0xff] }
 0x891   :  { %v2999_v52 = vpop.eup %2998 }
 0x892   :  { %v1035_v55 = vmul.f32 %v2999_v52, %v1012_v37  ;;  %v2225_v37 = vld [vmem:[%s4010_s7 + $0x138] sm:$0xff]  ;;  %v2828_v52 = vpack.c.bf16 %v2215_v48, %v2212_v50 }
 0x893   :  { %v2822_v39 = vpack.c.bf16 %v2225_v37, %v2222_v36 }
 0x894   :  { %v1037_v59 = vmul.f32 %v1035_v55, %v1014_v41  ;;  %v2229_v41 = vld [vmem:[%s4010_s7 + $0x158] sm:$0xff] }
 0x895   :  { %v3001_v60 = vpop.eup %3000 }
 0x896   :  { %v1036_v61 = vmul.f32 %v3001_v60, %v1018_v44  ;;  %2563 = vmatprep.mubr.f32.mxu0 %v1037_v59  ;;  %v2232_v44 = vld [vmem:[%s4010_s7 + $0x170] sm:$0xff] }
 0x897   :  { %v2824_v45 = vpack.c.bf16 %v2232_v44, %v2229_v41 }
 0x898   :  { %v1038_v1 = vmul.f32 %v1036_v61, %v1020_v46  ;;  %v2228_v46 = vld [vmem:[%s4010_s7 + $0x150] sm:$0xff] }
 0x899   :  { %v2826_v42 = vpack.c.bf16 %v2231_v47, %v2228_v46 }
 0x89a   :  { %2564 = vmatmul.mubr.f32.vlgmr.msra.gmra.mrb[16].mxu0 %v1038_v1 }
 0x96d   :  { %v2565_v0 = vpop.f32.mrb[16].mxu0 }
 0x96e   :  { %v3697_v3 = vadd.f32 %v2565_v0, %v3583_v51  ;;  %v1121_v4 = vpop.f32.mrb[17].mxu0  ;;  %v2211_v51 = vld [vmem:[%s4010_s7 + $0xc8] sm:$0xff] }
 0x96f   :  { %v3700_v6 = vadd.f32 %v1121_v4, %v3586_v53  ;;  %v2214_v53 = vld [vmem:[%s4010_s7 + $0xe0] sm:$0xff] }
 0x970   :  { %v1135_v7 = vmul.f32 %v3697_v3, %v3697_v3  ;;  %v2812_v12 = vpack.c.bf16 %v2214_v53, %v2211_v51 }
 0x971   :  { %v1134_v8 = vmul.f32 %v3700_v6, %v3700_v6 }
 0x972   :  { %v1139_v10 = vsel %vm126_vm0, %v1135_v7, 0.0  ;;  %2813 = vmatprep.subr.bf16.mxu1 %v2812_v12 }
 0x973   :  { %1140 = vadd.xlane.f32.xlu0 %v1139_v10  ;;  %v1136_v11 = vsel %vm126_vm0, %v1134_v8, 0.0  ;;  %2815 = vmatpush1.bf16.msra.mxu1 %v2814_v15  ;;  %v2209_v8 = vld [vmem:[%s4009_s6 + $0x1] ss:$0 sm:$0xff]  ;;  %v2227_v15 = vld [vmem:[%s4010_s7 + $0x148] sm:$0xff] }
 0x974   :  { %1137 = vadd.xlane.f32.xlu1 %v1136_v11  ;;  %2817 = vmatprep.subr.bf16.mxu1 %v2816_v22  ;;  %v2218_v10 = vld [vmem:[%s4010_s7 + $0x100] sm:$0xff]  ;;  %v2221_v11 = vld [vmem:[%s4010_s7 + $0x118] sm:$0xff]  ;;  %v2836_v21 = vpack.c.bf16 %v2227_v15, %v2224_v16 }
 0x975   :  { %v2832_v12 = vpack.c.bf16 %v2221_v11, %v2218_v10  ;;  %v2230_v22 = vld [vmem:[%s4010_s7 + $0x160] sm:$0xff] }
 0x976   :  { %v2840_v26 = vpack.c.bf16 %v2233_v25, %v2230_v22 }
 0x977   :  { %2819 = vmatpush1.bf16.msra.mxu1 %v2818_v30 }
 0x978   :  { %2821 = vmatprep.subr.bf16.mxu1 %v2820_v34 }
 0x97b   :  { %2823 = vmatpush1.bf16.msra.mxu1 %v2822_v39 }
 0x97c   :  { %2825 = vmatprep.subr.bf16.mxu1 %v2824_v45 }
 0x97f   :  { %2827 = vmatpush1.bf16.msra.mxu1 %v2826_v42 }
 0x980   :  { %2829 = vmatprep.subr.bf16.mxu1 %v2828_v52 }
 0xa00   :  { %v1141_v55 = vpop.xlane.xlu0 %1140 }
 0xa01   :  { %v1143_v59 = vmul.f32 0.015625, %v1141_v55  ;;  %v1138_v60 = vpop.xlane.xlu1 %1137 }
 0xa02   :  { %v1142_v61 = vmul.f32 0.015625, %v1138_v60 }
 0xa03   :  { %v1145_v1 = vadd.f32 1e-06, %v1143_v59 }
 0xa04   :  { %v1144_v0 = vadd.f32 1e-06, %v1142_v61 }
 0xa05   :  { %3002 = vrsqrt.f32 %v1145_v1 }
 0xa06   :  { %3004 = vrsqrt.f32 %v1144_v0 }
 0xa0f   :  { %v3003_v4 = vpop.eup %3002 }
 0xa10   :  { %v3005_v7 = vpop.eup %3004  ;;  %v1149_v14 = vmul.f32 %v3003_v4, %v3697_v3 }
 0xa11   :  { %v1148_v51 = vmul.f32 %v3005_v7, %v3700_v6 }
 0xa12   :  { %v1157_v18 = vmul.f32 %v2209_v8, %v1149_v14 }
 0xa13   :  { %v1156_v53 = vmul.f32 %v2209_v8, %v1148_v51 }
 0xa15   :  { %2234 = vmatmul.mubr.msk.f32.vlgmr.msra.gmra.mrb[14].mxu1 %vm126_vm0, %v1156_v53 }
 0xa16   :  { %2831 = vmatpush3.bf16.msra.mxu1 %v2828_v52  ;;  %1259 = vmatprep.mubr.f32.mxu1 %v3164_v28 }
 0xa17   :  { %2833 = vmatprep.subr.bf16.mxu1 %v2832_v12 }
 0xa19   :  { %2235 = vmatmul.mubr.msk.f32.gmra.mrb[16].mxu1 %vm126_vm0, %v1157_v18 }
 0xa1a   :  { %2835 = vmatpush3.bf16.msra.mxu1 %v2832_v12  ;;  %2582 = vmatprep.mubr.msk.f32.mxu1 %vm126_vm0, %v1156_v53 }
 0xa1b   :  { %2837 = vmatprep.subr.bf16.mxu1 %v2836_v21 }
 0xa1e   :  { %2839 = vmatpush3.bf16.msra.mxu1 %v2836_v21 }
 0xa1f   :  { %2841 = vmatprep.subr.bf16.mxu1 %v2840_v26 }
 0xa22   :  { %2843 = vmatpush3.bf16.msra.mxu1 %v2840_v26 }
 0xa25   :  { %2583 = vmatmul.mubr.msk.f32.vlgmr.msra.gmra.mrb[18].mxu1 %vm126_vm0, %v1157_v18 }
 0xae8   :  { %v1255_v30 = vpop.f32.mrb[14].mxu1 }
 0xae9   :  { %v1341_v31 = vmul.f32 %v1255_v30, %v3406_v56  ;;  %v1257_v33 = vpop.f32.mrb[15].mxu1 }
 0xaea   :  { %v1343_v34 = vmul.f32 %v1257_v33, %v3411_v57 }
 0xaec   :  { %v1345_v36 = vadd.f32 %v1343_v34, %v1341_v31  ;;  %v1261_v37 = vpop.f32.mrb[16].mxu1 }
 0xaed   :  { %v1342_v39 = vmul.f32 %v1261_v37, %v3415_v62  ;;  %v1263_v41 = vpop.f32.mrb[17].mxu1 }
 0xaee   :  { %v1344_v44 = vmul.f32 %v1263_v41, %v3420_v63  ;;  %v1347_v45 = vmul.f32 %v1345_v36, %v3422_v2  ;;  %v1349_v2 = vmul.f32 %v1345_v36, %v3441_v20  ;;  %v1351_v59 = vmul.f32 %v1345_v36, %v3448_v24 }
 0xaef   :  { %v1353_v17 = vmul.f32 %v1345_v36, %v3456_v29 }
 0xaf0   :  { %v1346_v46 = vadd.f32 %v1344_v44, %v1342_v39  ;;  %2589 = vmatprep.mubr.msk.f32.mxu0 %vm126_vm0, %v1347_v45 }
 0xaf2   :  { %v2949_v47 = vpack.i.bf16 %v1346_v46, %v1345_v36  ;;  %v1348_v63 = vmul.f32 %v1346_v46, %v3439_v19  ;;  %v1350_v55 = vmul.f32 %v1346_v46, %v3445_v23  ;;  %v1352_v60 = vmul.f32 %v1346_v46, %v3453_v27 }
 0xaf3   :  { %v1354_v19 = vmul.f32 %v1346_v46, %v3461_v32 }
 0xaf4   :  { %2950 = vrot.lane.b32.xlu1 %v2949_v47, %s3165_s19 }
 0xaf8   :  { %v2584_v42 = vpop.f32.mrb[18].mxu1 }
 0xaf9   :  { %v1332_v56 = vpop.f32.mrb[19].mxu1 }
 0xafa   :  { %v2850_v50 = vpack.c.bf16 %v2584_v42, %v1332_v56 }
 0xafc   :  { %2851 = vmatprep.subr.bf16.mxu1 %v2850_v50 }
 0xafd   :  { %2853 = vmatpush3.bf16.msra.mxu1 %v2850_v50 }
 0xb66   :  { %v2951_v57 = vpop.permute.xlu1 %2950 }
 0xb67   :  { %v2953_v48 = vunpack.i.h.bf16 %v2951_v57  ;;  %v2952_v52 = vunpack.i.l.bf16 %v2951_v57 }
 0xb69   :  { %v2844_v62 = vpack.c.bf16 %v2953_v48, %v2952_v52 }
 0xb6b   :  { %2846 = vmatprep.subr.msk.bf16.mxu0 %vm3431_vm1, %v2844_v62 }
 0xb6c   :  { %2849 = vmatpush3.bf16.xpose.msk.msra.mxu0 %vm3431_vm1, %v2844_v62 }
 0xb73   :  { %2590 = vmatmul.mubr.msk.f32.vlgmr.msra.gmra.mrb[18].mxu0 %vm126_vm0, %v1348_v63 }
 0xb74   :  { %2592 = vmatprep.mubr.msk.f32.mxu0 %vm126_vm0, %v1349_v2 }
 0xb77   :  { %2593 = vmatmul.mubr.msk.f32.gmra.mrb[20].mxu0 %vm126_vm0, %v1350_v55 }
 0xb78   :  { %2595 = vmatprep.mubr.msk.f32.mxu0 %vm126_vm0, %v1351_v59 }
 0xb7b   :  { %2596 = vmatmul.mubr.msk.f32.gmra.mrb[22].mxu0 %vm126_vm0, %v1352_v60 }
 0xb7c   :  { %2598 = vmatprep.mubr.msk.f32.mxu0 %vm126_vm0, %v1353_v17 }
 0xb7f   :  { %2599 = vmatmul.mubr.msk.f32.gmra.mrb[24].mxu0 %vm126_vm0, %v1354_v19 }
 0xb80   :  { %2633 = vmatprep.mubr.msk.f32.mxu0 %vm126_vm0, %v3539_v54 }
 0xc46   :  { %v2591_v20 = vpop.f32.mrb[18].mxu0 }
 0xc47   :  { %v1495_v23 = vmul.f32 0.25, %v2591_v20  ;;  %v1455_v24 = vpop.f32.mrb[19].mxu0 }
 0xc48   :  { %v1494_v61 = vmul.f32 0.25, %v1455_v24 }
 0xc49   :  { %v1503_v1 = vadd.f32 %v1495_v23, %v3470_v35 }
 0xc4a   :  { %v2594_v27 = vpop.f32.mrb[20].mxu0  ;;  %v1502_v7 = vadd.f32 %v1494_v61, %v3475_v38 }
 0xc4b   :  { %v1497_v0 = vmul.f32 0.25, %v2594_v27  ;;  %v1465_v29 = vpop.f32.mrb[21].mxu0  ;;  %v1513_v4 = vsel %vm501_vm2, %v1503_v1, -inf }
 0xc4c   :  { %1514 = vmax.xlane.f32.xlu0 %v1513_v4  ;;  %v1496_v8 = vmul.f32 0.25, %v1465_v29  ;;  %v1510_v11 = vsel %vm501_vm2, %v1502_v7, -inf }
 0xc4d   :  { %v1505_v54 = vadd.f32 %v1497_v0, %v3482_v43 }
 0xc4e   :  { %v2597_v32 = vpop.f32.mrb[22].mxu0  ;;  %v1504_v15 = vadd.f32 %v1496_v8, %v3489_v49 }
 0xc4f   :  { %v1475_v10 = vpop.f32.mrb[23].mxu0  ;;  %v1499_v12 = vmul.f32 0.25, %v2597_v32  ;;  %v1519_v16 = vsel %vm501_vm2, %v1505_v54, -inf }
 0xc50   :  { %v1498_v51 = vmul.f32 0.25, %v1475_v10  ;;  %1511 = vmax.xlane.f32.xlu0 %v1510_v11  ;;  %v1516_v21 = vsel %vm501_vm2, %v1504_v15, -inf }
 0xc51   :  { %v1507_v43 = vadd.f32 %v1499_v12, %v3497_v58 }
 0xc52   :  { %v2600_v53 = vpop.f32.mrb[24].mxu0  ;;  %v1506_v35 = vadd.f32 %v1498_v51, %v3504_v5 }
 0xc53   :  { %v1485_v14 = vpop.f32.mrb[25].mxu0  ;;  %v1501_v22 = vmul.f32 0.25, %v2600_v53  ;;  %v1525_v25 = vsel %vm501_vm2, %v1507_v43, -inf }
 0xc54   :  { %1520 = vmax.xlane.f32.xlu0 %v1519_v16  ;;  %v1522_v38 = vsel %vm501_vm2, %v1506_v35, -inf  ;;  %v1500_v18 = vmul.f32 0.25, %v1485_v14 }
 0xc55   :  { %1523 = vmax.xlane.f32.xlu1 %v1522_v38  ;;  %v1509_v49 = vadd.f32 %v1501_v22, %v3518_v13 }
 0xc56   :  { %v1508_v5 = vadd.f32 %v1500_v18, %v3511_v9 }
 0xc57   :  { %v1531_v30 = vsel %vm501_vm2, %v1509_v49, -inf }
 0xc58   :  { %1517 = vmax.xlane.f32.xlu0 %v1516_v21  ;;  %v1528_v26 = vsel %vm501_vm2, %v1508_v5, -inf }
 0xc5c   :  { %1526 = vmax.xlane.f32.xlu0 %v1525_v25 }
 0xc60   :  { %1529 = vmax.xlane.f32.xlu0 %v1528_v26 }
 0xc64   :  { %1532 = vmax.xlane.f32.xlu0 %v1531_v30 }
 0xcd9   :  { %v1515_v31 = vpop.xlane.xlu0 %1514 }
 0xcda   :  { %v1535_v33 = vsub.f32 %v1503_v1, %v1515_v31 }
 0xcdc   :  { %v1544_v34 = vmul.f32 1.442695, %v1535_v33 }
 0xcdd   :  { %v1512_v36 = vpop.xlane.xlu0 %1511 }
 0xcde   :  { %3006 = vpow2.f32 %v1544_v34  ;;  %v1534_v58 = vsub.f32 %v1502_v7, %v1512_v36 }
 0xce0   :  { %v1542_v37 = vmul.f32 1.442695, %v1534_v58  ;;  %v2258_v58 = vld [vmem:[%s4011_s8 + $0x40] sm:$0xff] }
 0xce1   :  { %v1521_v39 = vpop.xlane.xlu0 %1520 }
 0xce2   :  { %3008 = vpow2.f32 %v1542_v37  ;;  %v1537_v41 = vsub.f32 %v1505_v54, %v1521_v39  ;;  %v1524_v9 = vpop.xlane.xlu1 %1523  ;;  %v2259_v37 = vld [vmem:[%s4011_s8 + $0x48] sm:$0xff]  ;;  %v2260_v39 = vld [vmem:[%s4011_s8 + $0x50] sm:$0xff] }
 0xce3   :  { %v1538_v45 = vsub.f32 %v1506_v35, %v1524_v9  ;;  %v2261_v9 = vld [vmem:[%s4011_s8 + $0x58] sm:$0xff] }
 0xce4   :  { %v1548_v44 = vmul.f32 1.442695, %v1537_v41  ;;  %v2870_v41 = vpack.c.bf16 %v2259_v37, %v2258_v58  ;;  %v2280_v58 = vld [vmem:[%s4013_s10 + $0xd8] sm:$0xff] }
 0xce5   :  { %v1518_v46 = vpop.xlane.xlu0 %1517  ;;  %v1550_v42 = vmul.f32 1.442695, %v1538_v45  ;;  %v2262_v45 = vld [vmem:[%s4011_s8 + $0x60] sm:$0xff] }
 0xce6   :  { %3010 = vpow2.f32 %v1548_v44  ;;  %v1536_v13 = vsub.f32 %v1504_v15, %v1518_v46  ;;  %v2874_v44 = vpack.c.bf16 %v2261_v9, %v2260_v39  ;;  %v2263_v46 = vld [vmem:[%s4011_s8 + $0x68] sm:$0xff]  ;;  %2871 = vmatprep.subr.bf16.mxu1 %v2870_v41  ;;  %v2277_v39 = vld [vmem:[%s4013_s10 + $0xc0] sm:$0xff] }
 0xce8   :  { %v3007_v47 = vpop.eup %3006  ;;  %v1546_v56 = vmul.f32 1.442695, %v1536_v13  ;;  %v2878_v13 = vpack.c.bf16 %v2263_v46, %v2262_v45  ;;  %v2284_v45 = vld [vmem:[%s4013_s10 + $0xf8] sm:$0xff] }
 0xce9   :  { %v1527_v50 = vpop.xlane.xlu0 %1526  ;;  %v1561_v57 = vsel %vm501_vm2, %v3007_v47, 0.0 }
 0xcea   :  { %3012 = vpow2.f32 %v1546_v56  ;;  %v1539_v48 = vsub.f32 %v1507_v43, %v1527_v50  ;;  %1562 = vadd.xlane.f32.xlu0 %v1561_v57  ;;  %v3054_v57 = vld [vmem:[#allocation4 + $0x8] sm:$0xff] }
 0xceb   :  { %3014 = vpow2.f32 %v1550_v42  ;;  %v2265_v42 = vld [vmem:[%s4011_s8 + $0x78] sm:$0xff] }
 0xcec   :  { %v3009_v52 = vpop.eup %3008  ;;  %v1552_v62 = vmul.f32 1.442695, %v1539_v48 }
 0xced   :  { %v1530_v63 = vpop.xlane.xlu0 %1529  ;;  %v1558_v2 = vsel %vm501_vm2, %v3009_v52, 0.0 }
 0xcee   :  { %v1540_v55 = vsub.f32 %v1508_v5, %v1530_v63  ;;  %1559 = vadd.xlane.f32.xlu0 %v1558_v2  ;;  %3016 = vpow2.f32 %v1552_v62  ;;  %v3055_v62 = vld [vmem:[#allocation4] sm:$0xff] }
 0xcf0   :  { %v3011_v59 = vpop.eup %3010  ;;  %v1554_v60 = vmul.f32 1.442695, %v1540_v55 }
 0xcf1   :  { %v1533_v17 = vpop.xlane.xlu0 %1532  ;;  %v1567_v19 = vsel %vm501_vm2, %v3011_v59, 0.0 }
 0xcf2   :  { %3018 = vpow2.f32 %v1554_v60  ;;  %v1541_v20 = vsub.f32 %v1509_v49, %v1533_v17  ;;  %1568 = vadd.xlane.f32.xlu0 %v1567_v19  ;;  %v3057_v19 = vld [vmem:[#allocation4 + $0x10] sm:$0xff] }
 0xcf4   :  { %v3013_v23 = vpop.eup %3012  ;;  %v1556_v24 = vmul.f32 1.442695, %v1541_v20 }
 0xcf5   :  { %v1564_v61 = vsel %vm501_vm2, %v3013_v23, 0.0  ;;  %v3015_v1 = vpop.eup %3014 }
 0xcf6   :  { %3020 = vpow2.f32 %v1556_v24  ;;  %1565 = vadd.xlane.f32.xlu0 %v1564_v61  ;;  %v1570_v27 = vsel %vm501_vm2, %v3015_v1, 0.0  ;;  %v3058_v61 = vld [vmem:[#allocation4 + $0x28] sm:$0xff] }
 0xcf8   :  { %v3017_v0 = vpop.eup %3016 }
 0xcf9   :  { %v1573_v4 = vsel %vm501_vm2, %v3017_v0, 0.0 }
 0xcfa   :  { %1571 = vadd.xlane.f32.xlu0 %v1570_v27 }
 0xcfc   :  { %v3019_v29 = vpop.eup %3018 }
 0xcfd   :  { %v1576_v7 = vsel %vm501_vm2, %v3019_v29, 0.0 }
 0xcfe   :  { %1574 = vadd.xlane.f32.xlu0 %v1573_v4  ;;  %1577 = vadd.xlane.f32.xlu1 %v1576_v7 }
 0xd00   :  { %v3021_v32 = vpop.eup %3020 }
 0xd01   :  { %v1579_v8 = vsel %vm501_vm2, %v3021_v32, 0.0 }
 0xd02   :  { %1580 = vadd.xlane.f32.xlu0 %v1579_v8 }
 0xd77   :  { %v1563_v10 = vpop.xlane.xlu0 %1562 }
 0xd78   :  { %3022 = vrcp.f32 %v1563_v10 }
 0xd7b   :  { %v1560_v11 = vpop.xlane.xlu0 %1559 }
 0xd7c   :  { %3024 = vrcp.f32 %v1560_v11  ;;  %v3061_v11 = vld [vmem:[#allocation4 + $0x30] sm:$0xff] }
 0xd7f   :  { %v1569_v54 = vpop.xlane.xlu0 %1568 }
 0xd80   :  { %3026 = vrcp.f32 %v1569_v54 }
 0xd82   :  { %v3023_v53 = vpop.eup %3022 }
 0xd83   :  { %v1566_v51 = vpop.xlane.xlu0 %1565  ;;  %v1591_v16 = vmul.f32 %v3023_v53, %v3007_v47  ;;  %v2264_v47 = vld [vmem:[%s4011_s8 + $0x70] sm:$0xff] }
 0xd84   :  { %3028 = vrcp.f32 %v1566_v51  ;;  %v2882_v56 = vpack.c.bf16 %v2265_v42, %v2264_v47  ;;  %v2283_v47 = vld [vmem:[%s4013_s10 + $0xf0] sm:$0xff] }
 0xd86   :  { %v3025_v35 = vpop.eup %3024 }
 0xd87   :  { %v1572_v12 = vpop.xlane.xlu0 %1571  ;;  %v1590_v14 = vmul.f32 %v3025_v35, %v3009_v52 }
 0xd88   :  { %3030 = vrcp.f32 %v1572_v12 }
 0xd89   :  { %2605 = vmatprep.mubr.msk.f32.mxu1 %vm501_vm2, %v1590_v14 }
 0xd8a   :  { %2606 = vmatmul.mubr.msk.f32.vlgmr.msra.gmra.mrb[20].mxu1 %vm501_vm2, %v1591_v16  ;;  %v3027_v18 = vpop.eup %3026 }
 0xd8b   :  { %v1578_v15 = vpop.xlane.xlu1 %1577  ;;  %v1575_v38 = vpop.xlane.xlu0 %1574  ;;  %v1593_v25 = vmul.f32 %v3027_v18, %v3011_v59  ;;  %2873 = vmatpush3.bf16.msra.mxu1 %v2870_v41  ;;  %v3056_v59 = vld [vmem:[#allocation4 + $0x18] sm:$0xff]  ;;  %v2279_v41 = vld [vmem:[%s4013_s10 + $0xd0] sm:$0xff] }
 0xd8c   :  { %3032 = vrcp.f32 %v1578_v15  ;;  %2875 = vmatprep.subr.bf16.mxu1 %v2874_v44  ;;  %v2896_v9 = vpack.c.bf16 %v2279_v41, %v2277_v39 }
 0xd8d   :  { %3034 = vrcp.f32 %v1575_v38 }
 0xd8e   :  { %v3029_v21 = vpop.eup %3028 }
 0xd8f   :  { %v1581_v43 = vpop.xlane.xlu0 %1580  ;;  %v1592_v22 = vmul.f32 %v3029_v21, %v3013_v23  ;;  %2877 = vmatpush3.bf16.msra.mxu1 %v2874_v44  ;;  %v2282_v44 = vld [vmem:[%s4013_s10 + $0xe8] sm:$0xff] }
 0xd90   :  { %3036 = vrcp.f32 %v1581_v43  ;;  %2879 = vmatprep.subr.bf16.mxu1 %v2878_v13  ;;  %v2898_v46 = vpack.c.bf16 %v2284_v45, %v2282_v44 }
 0xd91   :  { %2608 = vmatprep.mubr.msk.f32.mxu1 %vm501_vm2, %v1592_v22  ;;  %v2269_v22 = vld [vmem:[%s4013_s10 + $0x80] sm:$0xff] }
 0xd92   :  { %v3031_v5 = vpop.eup %3030  ;;  %2609 = vmatmul.mubr.msk.f32.gmra.mrb[22].mxu1 %vm501_vm2, %v1593_v25  ;;  %v2271_v25 = vld [vmem:[%s4013_s10 + $0x90] sm:$0xff] }
 0xd93   :  { %v1594_v26 = vmul.f32 %v3031_v5, %v3015_v1  ;;  %2881 = vmatpush3.bf16.msra.mxu1 %v2878_v13  ;;  %v2888_v5 = vpack.c.bf16 %v2271_v25, %v2269_v22  ;;  %v2281_v13 = vld [vmem:[%s4013_s10 + $0xe0] sm:$0xff] }
 0xd94   :  { %2883 = vmatprep.subr.bf16.mxu1 %v2882_v56  ;;  %v2900_v42 = vpack.c.bf16 %v2283_v47, %v2281_v13 }
 0xd95   :  { %2611 = vmatprep.mubr.msk.f32.mxu1 %vm501_vm2, %v1594_v26  ;;  %v2274_v26 = vld [vmem:[%s4013_s10 + $0xa8] sm:$0xff] }
 0xd96   :  { %v3033_v49 = vpop.eup %3032 }
 0xd97   :  { %v3035_v30 = vpop.eup %3034  ;;  %v1596_v31 = vmul.f32 %v3033_v49, %v3019_v29  ;;  %2885 = vmatpush3.bf16.msra.mxu1 %v2882_v56  ;;  %v2276_v49 = vld [vmem:[%s4013_s10 + $0xb8] sm:$0xff] }
 0xd98   :  { %v1595_v33 = vmul.f32 %v3035_v30, %v3017_v0  ;;  %v3059_v0 = vld [vmem:[#allocation4 + $0x20] sm:$0xff]  ;;  %v2890_v30 = vpack.c.bf16 %v2276_v49, %v2274_v26 }
 0xd9a   :  { %v3037_v34 = vpop.eup %3036  ;;  %2612 = vmatmul.mubr.msk.f32.gmra.mrb[24].mxu1 %vm501_vm2, %v1595_v33  ;;  %v2275_v33 = vld [vmem:[%s4013_s10 + $0xb0] sm:$0xff] }
 0xd9b   :  { %2614 = vmatprep.mubr.msk.f32.mxu1 %vm501_vm2, %v1596_v31  ;;  %v1597_v36 = vmul.f32 %v3037_v34, %v3021_v32  ;;  %v3060_v32 = vld [vmem:[#allocation4 + $0x38] sm:$0xff]  ;;  %v2273_v31 = vld [vmem:[%s4013_s10 + $0xa0] sm:$0xff] }
 0xd9c   :  { %v2892_v34 = vpack.c.bf16 %v2275_v33, %v2273_v31 }
 0xd9e   :  { %2615 = vmatmul.mubr.msk.f32.gmra.mrb[26].mxu1 %vm501_vm2, %v1597_v36  ;;  %v2278_v36 = vld [vmem:[%s4013_s10 + $0xc8] sm:$0xff] }
 0xd9f   :  { %v2894_v37 = vpack.c.bf16 %v2280_v58, %v2278_v36 }
 0xe5d   :  { %v2607_v50 = vpop.f32.mrb[20].mxu1 }
 0xe5e   :  { %v1728_v48 = vmul.f32 %v3054_v57, %v2607_v50  ;;  %v1688_v52 = vpop.f32.mrb[21].mxu1 }
 0xe5f   :  { %v1727_v63 = vmul.f32 %v3055_v62, %v1688_v52 }
 0xe61   :  { %v2854_v2 = vpack.c.bf16 %v1728_v48, %v1727_v63 }
 0xe63   :  { %2855 = vmatprep.subr.bf16.mxu0 %v2854_v2 }
 0xe64   :  { %2857 = vmatpush3.bf16.msra.mxu0 %v2854_v2 }
 0xe65   :  { %v2610_v55 = vpop.f32.mrb[22].mxu1 }
 0xe66   :  { %v1730_v60 = vmul.f32 %v3056_v59, %v2610_v55  ;;  %v1698_v17 = vpop.f32.mrb[23].mxu1  ;;  %v2268_v55 = vld [vmem:[#allocation7 + $0x1] ss:$0 sm:$0xff] }
 0xe67   :  { %v1729_v20 = vmul.f32 %v3057_v19, %v1698_v17 }
 0xe69   :  { %v2858_v23 = vpack.c.bf16 %v1730_v60, %v1729_v20  ;;  %v2289_v20 = vld [vmem:[%s4014_s11 + $0x80] sm:$0xff] }
 0xe6b   :  { %2859 = vmatprep.subr.bf16.mxu0 %v2858_v23 }
 0xe6c   :  { %2861 = vmatpush3.bf16.msra.mxu0 %v2858_v23  ;;  %v2290_v23 = vld [vmem:[%s4014_s11 + $0x88] sm:$0xff] }
 0xe6d   :  { %v2613_v24 = vpop.f32.mrb[24].mxu1 }
 0xe6e   :  { %v1732_v1 = vmul.f32 %v3058_v61, %v2613_v24  ;;  %v1708_v27 = vpop.f32.mrb[25].mxu1  ;;  %v2902_v24 = vpack.c.bf16 %v2290_v23, %v2289_v20  ;;  %v2291_v61 = vld [vmem:[%s4014_s11 + $0x90] sm:$0xff] }
 0xe6f   :  { %v1731_v29 = vmul.f32 %v3059_v0, %v1708_v27  ;;  %v2293_v27 = vld [vmem:[%s4014_s11 + $0xa0] sm:$0xff]  ;;  %v2294_v0 = vld [vmem:[%s4014_s11 + $0xa8] sm:$0xff] }
 0xe70   :  { %2903 = vmatprep.subr.bf16.mxu1 %v2902_v24 }
 0xe71   :  { %v2862_v4 = vpack.c.bf16 %v1732_v1, %v1731_v29  ;;  %v2616_v7 = vpop.f32.mrb[26].mxu1  ;;  %v2910_v29 = vpack.c.bf16 %v2294_v0, %v2293_v27 }
 0xe72   :  { %v1734_v8 = vmul.f32 %v3060_v32, %v2616_v7  ;;  %v1718_v10 = vpop.f32.mrb[27].mxu1  ;;  %v2296_v7 = vld [vmem:[%s4014_s11 + $0xb8] sm:$0xff] }
 0xe73   :  { %v1733_v54 = vmul.f32 %v3061_v11, %v1718_v10  ;;  %2863 = vmatprep.subr.bf16.mxu0 %v2862_v4  ;;  %v2298_v10 = vld [vmem:[%s4014_s11 + $0xc8] sm:$0xff] }
 0xe74   :  { %2865 = vmatpush3.bf16.msra.mxu0 %v2862_v4  ;;  %v2295_v4 = vld [vmem:[%s4014_s11 + $0xb0] sm:$0xff] }
 0xe75   :  { %v2866_v51 = vpack.c.bf16 %v1734_v8, %v1733_v54  ;;  %v2914_v32 = vpack.c.bf16 %v2296_v7, %v2295_v4  ;;  %v2297_v8 = vld [vmem:[%s4014_s11 + $0xc0] sm:$0xff]  ;;  %v2299_v54 = vld [vmem:[%s4014_s11 + $0xd0] sm:$0xff] }
 0xe76   :  { %v2918_v11 = vpack.c.bf16 %v2298_v10, %v2297_v8 }
 0xe77   :  { %2867 = vmatprep.subr.bf16.mxu0 %v2866_v51 }
 0xe78   :  { %2869 = vmatpush3.bf16.msra.mxu0 %v2866_v51  ;;  %v2300_v51 = vld [vmem:[%s4014_s11 + $0xd8] sm:$0xff] }
 0xe7b   :  { %2634 = vmatmul.mubr.msk.f32.vlgmr.msra.gmra.mrb[26].mxu0 %vm126_vm0, %v3575_v40 }
 0xe7c   :  { %2015 = vmatprep.mubr.f32.mxu0 %v3164_v28 }
 0xf4e   :  { %v2635_v53 = vpop.f32.mrb[26].mxu0 }
 0xf4f   :  { %v1801_v35 = vpop.f32.mrb[27].mxu0 }
 0xf50   :  { %2652 = vmatprep.mubr.msk.f32.mxu1 %vm126_vm0, %v1801_v35  ;;  %v2301_v35 = vld [vmem:[%s4014_s11 + $0xe0] sm:$0xff] }
 0xf51   :  { %2653 = vmatmul.mubr.msk.f32.vlgmr.msra.gmra.mrb[28].mxu1 %vm126_vm0, %v2635_v53  ;;  %v2922_v53 = vpack.c.bf16 %v2300_v51, %v2299_v54 }
 0xf52   :  { %2905 = vmatpush3.bf16.msra.mxu1 %v2902_v24 }
0x1024   :  { %v2654_v12 = vpop.f32.mrb[28].mxu1 }
0x1025   :  { %v3879_v14 = vadd.f32 %v2654_v12, %v3697_v3  ;;  %v1891_v16 = vpop.f32.mrb[29].mxu1  ;;  %v2270_v3 = vld [vmem:[%s4013_s10 + $0x88] sm:$0xff] }
0x1026   :  { %v3882_v15 = vadd.f32 %v1891_v16, %v3700_v6  ;;  %v2272_v6 = vld [vmem:[%s4013_s10 + $0x98] sm:$0xff]  ;;  %v2302_v12 = vld [vmem:[%s4014_s11 + $0xe8] sm:$0xff] }
0x1027   :  { %v1905_v38 = vmul.f32 %v3879_v14, %v3879_v14  ;;  %v2886_v43 = vpack.c.bf16 %v2272_v6, %v2270_v3  ;;  %v2926_v16 = vpack.c.bf16 %v2302_v12, %v2301_v35 }
0x1028   :  { %v1904_v40 = vmul.f32 %v3882_v15, %v3882_v15 }
0x1029   :  { %v1909_v18 = vsel %vm126_vm0, %v1905_v38, 0.0  ;;  %2887 = vmatprep.subr.bf16.mxu0 %v2886_v43  ;;  %v2303_v38 = vld [vmem:[%s4014_s11 + $0xf0] sm:$0xff] }
0x102a   :  { %1910 = vadd.xlane.f32.xlu0 %v1909_v18  ;;  %v1906_v21 = vsel %vm126_vm0, %v1904_v40, 0.0  ;;  %2889 = vmatpush1.bf16.msra.mxu0 %v2888_v5  ;;  %v2304_v40 = vld [vmem:[%s4014_s11 + $0xf8] sm:$0xff] }
0x102b   :  { %1907 = vadd.xlane.f32.xlu1 %v1906_v21  ;;  %2891 = vmatprep.subr.bf16.mxu0 %v2890_v30  ;;  %v2930_v18 = vpack.c.bf16 %v2304_v40, %v2303_v38 }
0x102e   :  { %2893 = vmatpush1.bf16.msra.mxu0 %v2892_v34 }
0x102f   :  { %2895 = vmatprep.subr.bf16.mxu0 %v2894_v37 }
0x1032   :  { %2897 = vmatpush1.bf16.msra.mxu0 %v2896_v9 }
0x1033   :  { %2899 = vmatprep.subr.bf16.mxu0 %v2898_v46 }
0x1036   :  { %2901 = vmatpush1.bf16.msra.mxu0 %v2900_v42 }
0x10b7   :  { %v1911_v56 = vpop.xlane.xlu0 %1910 }
0x10b8   :  { %v1913_v50 = vmul.f32 0.015625, %v1911_v56  ;;  %v1908_v57 = vpop.xlane.xlu1 %1907 }
0x10b9   :  { %v1912_v48 = vmul.f32 0.015625, %v1908_v57 }
0x10ba   :  { %v1915_v52 = vadd.f32 1e-06, %v1913_v50 }
0x10bb   :  { %v1914_v62 = vadd.f32 1e-06, %v1912_v48 }
0x10bc   :  { %3038 = vrsqrt.f32 %v1915_v52 }
0x10bd   :  { %3040 = vrsqrt.f32 %v1914_v62 }
0x10c6   :  { %v3039_v63 = vpop.eup %3038 }
0x10c7   :  { %v3041_v2 = vpop.eup %3040  ;;  %v1919_v17 = vmul.f32 %v3039_v63, %v3879_v14 }
0x10c8   :  { %v1918_v59 = vmul.f32 %v3041_v2, %v3882_v15 }
0x10c9   :  { %v1927_v19 = vmul.f32 %v2268_v55, %v1919_v17 }
0x10ca   :  { %v1926_v60 = vmul.f32 %v2268_v55, %v1918_v59 }
0x10cc   :  { %2285 = vmatmul.mubr.msk.f32.vlgmr.msra.gmra.mrb[28].mxu0 %vm126_vm0, %v1926_v60 }
0x10cd   :  { %2021 = vmatprep.mubr.f32.mxu0 %v3164_v28  ;;  %v2292_v28 = vld [vmem:[%s4014_s11 + $0x98] sm:$0xff] }
0x10ce   :  { %v2906_v1 = vpack.c.bf16 %v2292_v28, %v2291_v61 }
0x10d0   :  { %2286 = vmatmul.mubr.msk.f32.gmra.mrb[30].mxu0 %vm126_vm0, %v1927_v19  ;;  %2907 = vmatprep.subr.bf16.mxu1 %v2906_v1 }
0x10d1   :  { %2909 = vmatpush3.bf16.msra.mxu1 %v2906_v1 }
0x10d2   :  { %2911 = vmatprep.subr.bf16.mxu1 %v2910_v29 }
0x10d5   :  { %2913 = vmatpush3.bf16.msra.mxu1 %v2910_v29 }
0x10d6   :  { %2915 = vmatprep.subr.bf16.mxu1 %v2914_v32 }
0x10d9   :  { %2917 = vmatpush3.bf16.msra.mxu1 %v2914_v32 }
0x10da   :  { %2919 = vmatprep.subr.bf16.mxu1 %v2918_v11 }
0x10dd   :  { %2921 = vmatpush3.bf16.msra.mxu1 %v2918_v11 }
0x10de   :  { %2923 = vmatprep.subr.bf16.mxu1 %v2922_v53 }
0x10e1   :  { %2925 = vmatpush3.bf16.msra.mxu1 %v2922_v53 }
0x10e2   :  { %2927 = vmatprep.subr.bf16.mxu1 %v2926_v16 }
0x10e5   :  { %2929 = vmatpush3.bf16.msra.mxu1 %v2926_v16 }
0x10e6   :  { %2931 = vmatprep.subr.bf16.mxu1 %v2930_v18 }
0x10e9   :  { %2933 = vmatpush3.bf16.msra.mxu1 %v2930_v18 }
0x119f   :  { %v2017_v21 = vpop.f32.mrb[28].mxu0 }
0x11a0   :  { %v2287_v3 = vmul.f32 -1.442695, %v2017_v21  ;;  %v2019_v6 = vpop.f32.mrb[29].mxu0 }
0x11a2   :  { %3042 = vpow2.f32 %v2287_v3 }
0x11a3   :  { %v2023_v43 = vpop.f32.mrb[30].mxu0 }
0x11a4   :  { %v2288_v22 = vmul.f32 -1.442695, %v2023_v43  ;;  %v2025_v25 = vpop.f32.mrb[31].mxu0 }
0x11a6   :  { %3044 = vpow2.f32 %v2288_v22 }
0x11ac   :  { %v3043_v5 = vpop.eup %3042 }
0x11ad   :  { %v2034_v26 = vadd.f32 1.0, %v3043_v5 }
0x11af   :  { %3046 = vrcp.f32 %v2034_v26 }
0x11b0   :  { %v3045_v49 = vpop.eup %3044 }
0x11b1   :  { %v2035_v30 = vadd.f32 1.0, %v3045_v49 }
0x11b3   :  { %3048 = vrcp.f32 %v2035_v30 }
0x11b9   :  { %v3047_v31 = vpop.eup %3046 }
0x11ba   :  { %v2040_v33 = vmul.f32 %v3047_v31, %v2017_v21 }
0x11bc   :  { %v2042_v34 = vmul.f32 %v2040_v33, %v2019_v6 }
0x11bd   :  { %v3049_v36 = vpop.eup %3048 }
0x11be   :  { %v2041_v58 = vmul.f32 %v3049_v36, %v2023_v43  ;;  %2687 = vmatprep.mubr.f32.mxu1 %v2042_v34 }
0x11c0   :  { %v2043_v37 = vmul.f32 %v2041_v58, %v2025_v25 }
0x11c2   :  { %2688 = vmatmul.mubr.f32.vlgmr.msra.gmra.mrb[30].mxu1 %v2043_v37 }
0x1295   :  { %v2689_v39 = vpop.f32.mrb[30].mxu1 }
0x1296   :  { %v2137_v41 = vadd.f32 %v2689_v39, %v3879_v14  ;;  %v2127_v9 = vpop.f32.mrb[31].mxu1  ;;  %v2305_v14 = vld [vmem:[%s4015_s12] ss:$0 sm:$0xff] }
0x1297   :  { %v2136_v44 = vadd.f32 %v2127_v9, %v3882_v15 }
0x1298   :  { %v2140_v45 = vmul.f32 %v2137_v41, %v2137_v41 }
0x1299   :  { %v2139_v46 = vmul.f32 %v2136_v44, %v2136_v44 }
0x129a   :  { %v2144_v13 = vsel %vm126_vm0, %v2140_v45, 0.0 }
0x129b   :  { %2145 = vadd.xlane.f32.xlu1 %v2144_v13  ;;  %v2141_v47 = vsel %vm126_vm0, %v2139_v46, 0.0 }
0x129c   :  { %2142 = vadd.xlane.f32.xlu0 %v2141_v47 }
0x1328   :  { %v2146_v42 = vpop.xlane.xlu1 %2145 }
0x1329   :  { %v2148_v56 = vmul.f32 0.015625, %v2146_v42  ;;  %v2143_v15 = vpop.xlane.xlu0 %2142 }
0x132a   :  { %v2147_v62 = vmul.f32 0.015625, %v2143_v15 }
0x132b   :  { %v2150_v50 = vadd.f32 1e-06, %v2148_v56 }
0x132c   :  { %v2149_v63 = vadd.f32 1e-06, %v2147_v62 }
0x132d   :  { %3050 = vrsqrt.f32 %v2150_v50 }
0x132e   :  { %3052 = vrsqrt.f32 %v2149_v63 }
0x1337   :  { %v3051_v57 = vpop.eup %3050 }
0x1338   :  { %v2154_v48 = vmul.f32 %v3051_v57, %v2137_v41  ;;  %v3053_v2 = vpop.eup %3052 }
0x1339   :  { %v2153_v55 = vmul.f32 %v3053_v2, %v2136_v44 }
0x133a   :  { %v2162_v52 = vmul.f32 %v2305_v14, %v2154_v48 }
0x133b   :  { %v2161_v59 = vmul.f32 %v2305_v14, %v2153_v55 }
0x133c   :  { %2164 = vrot.lane.b32.xlu1 %v2162_v52, %s3165_s19 }
0x13ae   :  { %v2165_v60 = vpop.permute.xlu1 %2164 }
0x13af   :  { %v2167_v17 = vsel %vm126_vm0, %v2161_v59, %v2165_v60 }
0x13b0   :  { %2168 = vst [vmem:[%s4016_s13] sm:$0xff] %v2167_v17 }
0x13b1   :  { %2173 = vsyncpa [#allocation3], 1 }
0x13b2   :  { %2174 = vsyncpa [#allocation5], 1 }
0x13b3   :  { %2175 = vsyncpa [#allocation8], 1 }

</bundles_post_ra>
